<compile_context>
chip_gen: v7x
topology: tpu7x:2x2x1
jax: 0.10.0
libtpu: 0.0.40
codegen_flags: <defaults>
</compile_context>

<pallas_src>
import numpy as np
import jax
import jax.numpy as jnp
from jax.experimental import pallas as pl
from jax.experimental.pallas import tpu as pltpu

# --- model hyper-parameters (module defaults) ---
HIDDEN = 64
NUM_HEADS = 4
HEAD_DIM = HIDDEN // NUM_HEADS
LN_EPS = 1e-5
NEG_INF = -1e30


# ----------------------------- in-kernel helpers ---------------------------
def _layernorm(x, gamma, beta):
    mu = jnp.mean(x, axis=-1, keepdims=True)
    var = jnp.mean(jnp.square(x - mu), axis=-1, keepdims=True)
    return (x - mu) * jax.lax.rsqrt(var + LN_EPS) * gamma + beta


def _mha(q_rows, kv_rows, w_in, b_in, w_out, b_out,
         bs, Lq, Lk, mask_add, self_attn):
    """PyTorch-style nn.MultiheadAttention forward (eval, no dropout).

    q_rows: (bs*Lq, H) batch-major rows.  kv_rows: (bs*Lk, H).
    w_in: (H, 3H) packed q|k|v columns; the q block (and q bias) are already
    pre-scaled by 1/sqrt(HEAD_DIM) at parameter-preparation time.
    Heads accumulate directly into w_out row-blocks (no lane concatenate).
    """
    H = HIDDEN
    if self_attn:
        # Single fused QKV projection (one MXU push/drain).
        qkv = jnp.dot(q_rows, w_in, preferred_element_type=jnp.float32) + b_in
        q2, k2, v2 = qkv[:, :H], qkv[:, H:2 * H], qkv[:, 2 * H:]
    else:
        q2 = (jnp.dot(q_rows, w_in[:, :H],
                      preferred_element_type=jnp.float32) + b_in[:, :H])
        kv = (jnp.dot(kv_rows, w_in[:, H:],
                      preferred_element_type=jnp.float32) + b_in[:, H:])
        k2, v2 = kv[:, :H], kv[:, H:]

    q = q2.reshape(bs, Lq, H)
    k = k2.reshape(bs, Lk, H)
    v = v2.reshape(bs, Lk, H)

    acc = None
    for h in range(NUM_HEADS):  # static unroll (NUM_HEADS = 4)
        sl = slice(h * HEAD_DIM, (h + 1) * HEAD_DIM)
        # scores (bs, Lq, Lk); batch stays a batch dim of the MXU op.
        s = jnp.einsum('bqd,bkd->bqk', q[:, :, sl], k[:, :, sl],
                       preferred_element_type=jnp.float32)
        if mask_add is not None:
            s = s + mask_add  # (Lq, Lk) additive mask broadcasts over batch
        s = s - jnp.max(s, axis=-1, keepdims=True)
        p = jnp.exp(s)
        p = p * pl.reciprocal(jnp.sum(p, axis=-1, keepdims=True), approx=True)
        ctx = jnp.einsum('bqk,bkd->bqd', p, v[:, :, sl],
                         preferred_element_type=jnp.float32)     # (bs,Lq,HD)
        part = jnp.dot(ctx.reshape(bs * Lq, HEAD_DIM), w_out[sl, :],
                       preferred_element_type=jnp.float32)       # (bs*Lq, H)
        acc = part if acc is None else acc + part
    return acc + b_out


# --------------------------------- kernel ----------------------------------
def core_layer_kernel(
        x_ref, kv_ref,
        in_w1_ref, in_b1_ref, out_w1_ref, out_b1_ref, ln1_g_ref, ln1_b_ref,
        in_w2_ref, in_b2_ref, out_w2_ref, out_b2_ref, ln2_g_ref, ln2_b_ref,
        mlp_w1_ref, mlp_b1_ref, mlp_w2_ref, mlp_b2_ref, lnm_g_ref, lnm_b_ref,
        o_ref):
    bs, L, H = x_ref.shape
    Lk = kv_ref.shape[1]

    # Batch folded into sublane rows for all projections / LayerNorms.
    h = x_ref[...].reshape(bs * L, H)
    kv = kv_ref[...].reshape(bs * Lk, H)

    # Causal additive mask (torch.triu(..., 1)) built once, broadcast over batch.
    row = jax.lax.broadcasted_iota(jnp.int32, (L, L), 0)
    col = jax.lax.broadcasted_iota(jnp.int32, (L, L), 1)
    causal_add = jnp.where(col > row, NEG_INF, 0.0).astype(jnp.float32)

    # causal self-attention + residual + LN1
    a1 = _mha(h, h, in_w1_ref[...], in_b1_ref[...],
              out_w1_ref[...], out_b1_ref[...],
              bs, L, L, causal_add, self_attn=True)
    h = _layernorm(a1 + h, ln1_g_ref[...], ln1_b_ref[...])

    # cross-attention over kv_cross + residual + LN2
    a2 = _mha(h, kv, in_w2_ref[...], in_b2_ref[...],
              out_w2_ref[...], out_b2_ref[...],
              bs, L, Lk, None, self_attn=False)
    h = _layernorm(a2 + h, ln2_g_ref[...], ln2_b_ref[...])

    # MLP (Linear -> ELU -> Linear) + residual + LN
    m1 = (jnp.dot(h, mlp_w1_ref[...], preferred_element_type=jnp.float32)
          + mlp_b1_ref[...])
    # ELU(alpha=1).  TODO(synk): expm1 would be marginally more precise for
    # tiny negatives; exp(x)-1 is the Mosaic-safe formulation (diff ~1e-7).
    m1 = jnp.where(m1 > 0.0, m1, jnp.exp(m1) - 1.0)
    m2 = (jnp.dot(m1, mlp_w2_ref[...], preferred_element_type=jnp.float32)
          + mlp_b2_ref[...])
    h = _layernorm(m2 + h, lnm_g_ref[...], lnm_b_ref[...])

    o_ref[...] = h.reshape(bs, L, H)


# ------------------------------ glue / wrapper ------------------------------
def init_params(key):
    """Weights stored pre-transposed as (in_features, out_features).
    The 1/sqrt(HEAD_DIM) attention scale is folded into the Q projection
    columns (weights AND bias) here, once."""
    def nrm(k, shape, scale=0.05):
        return scale * jax.random.normal(k, shape, dtype=jnp.float32)

    ks = jax.random.split(key, 6)
    q_scale = 1.0 / float(np.sqrt(HEAD_DIM))

    def attn_in(k):
        w = nrm(k, (HIDDEN, 3 * HIDDEN))
        b = jnp.zeros((1, 3 * HIDDEN), jnp.float32)
        w = w.at[:, :HIDDEN].multiply(q_scale)
        b = b.at[:, :HIDDEN].multiply(q_scale)
        return w, b

    in_w1, in_b1 = attn_in(ks[0])
    in_w2, in_b2 = attn_in(ks[2])
    return {
        "in_w1": in_w1, "in_b1": in_b1,
        "out_w1": nrm(ks[1], (HIDDEN, HIDDEN)),
        "out_b1": jnp.zeros((1, HIDDEN), jnp.float32),
        "ln1_g": jnp.ones((1, HIDDEN), jnp.float32),
        "ln1_b": jnp.zeros((1, HIDDEN), jnp.float32),
        "in_w2": in_w2, "in_b2": in_b2,
        "out_w2": nrm(ks[3], (HIDDEN, HIDDEN)),
        "out_b2": jnp.zeros((1, HIDDEN), jnp.float32),
        "ln2_g": jnp.ones((1, HIDDEN), jnp.float32),
        "ln2_b": jnp.zeros((1, HIDDEN), jnp.float32),
        "mlp_w1": nrm(ks[4], (HIDDEN, 4 * HIDDEN)),
        "mlp_b1": jnp.zeros((1, 4 * HIDDEN), jnp.float32),
        "mlp_w2": nrm(ks[5], (4 * HIDDEN, HIDDEN)),
        "mlp_b2": jnp.zeros((1, HIDDEN), jnp.float32),
        "lnm_g": jnp.ones((1, HIDDEN), jnp.float32),
        "lnm_b": jnp.zeros((1, HIDDEN), jnp.float32),
    }


@jax.jit
def core_layer_forward(x, kv_cross, params):
    bs, L, H = x.shape
    p = params
    args = (x, kv_cross,
            p["in_w1"], p["in_b1"], p["out_w1"], p["out_b1"],
            p["ln1_g"], p["ln1_b"],
            p["in_w2"], p["in_b2"], p["out_w2"], p["out_b2"],
            p["ln2_g"], p["ln2_b"],
            p["mlp_w1"], p["mlp_b1"], p["mlp_w2"], p["mlp_b2"],
            p["lnm_g"], p["lnm_b"])

    vmem = pl.BlockSpec(memory_space=pltpu.MemorySpace.VMEM)
    return pl.pallas_call(
        core_layer_kernel,
        out_shape=jax.ShapeDtypeStruct((bs, L, H), jnp.float32),
        in_specs=[vmem] * len(args),   # everything VMEM-resident, no grid
        out_specs=vmem,
    )(*args)


if __name__ == "__main__":
    key = jax.random.PRNGKey(0)
    k_p, k_x, k_e = jax.random.split(key, 3)

    BS, L_DEC, L_ENC = 2, 8, 8
    params = init_params(k_p)
    x = jax.random.normal(k_x, (BS, L_DEC, HIDDEN), dtype=jnp.float32)
    kv_cross = jax.random.normal(k_e, (BS, L_ENC, HIDDEN), dtype=jnp.float32)

    out = core_layer_forward(x, kv_cross, params)
    out = jax.block_until_ready(out)
    assert out.shape == (BS, L_DEC, HIDDEN) and out.dtype == jnp.float32
    assert bool(jnp.all(jnp.isfinite(out)))
    print("KERNEL_OK")
</pallas_src>

<mosaic_0001>
module attributes {stable_mosaic.version = 11 : i64} {
  func.func @core_layer_kernel(%arg0: memref<2x8x64xf32, #tpu.memory_space<vmem>>, %arg1: memref<2x8x64xf32, #tpu.memory_space<vmem>>, %arg2: memref<64x192xf32, #tpu.memory_space<vmem>>, %arg3: memref<1x192xf32, #tpu.memory_space<vmem>>, %arg4: memref<64x64xf32, #tpu.memory_space<vmem>>, %arg5: memref<1x64xf32, #tpu.memory_space<vmem>>, %arg6: memref<1x64xf32, #tpu.memory_space<vmem>>, %arg7: memref<1x64xf32, #tpu.memory_space<vmem>>, %arg8: memref<64x192xf32, #tpu.memory_space<vmem>>, %arg9: memref<1x192xf32, #tpu.memory_space<vmem>>, %arg10: memref<64x64xf32, #tpu.memory_space<vmem>>, %arg11: memref<1x64xf32, #tpu.memory_space<vmem>>, %arg12: memref<1x64xf32, #tpu.memory_space<vmem>>, %arg13: memref<1x64xf32, #tpu.memory_space<vmem>>, %arg14: memref<64x256xf32, #tpu.memory_space<vmem>>, %arg15: memref<1x256xf32, #tpu.memory_space<vmem>>, %arg16: memref<256x64xf32, #tpu.memory_space<vmem>>, %arg17: memref<1x64xf32, #tpu.memory_space<vmem>>, %arg18: memref<1x64xf32, #tpu.memory_space<vmem>>, %arg19: memref<1x64xf32, #tpu.memory_space<vmem>>, %arg20: memref<2x8x64xf32, #tpu.memory_space<vmem>>) attributes {dimension_semantics = [], scalar_prefetch = 0 : i64, scratch_operands = 0 : i64, tpu.core_type = #tpu.core_type<tc>} {
    %c0 = arith.constant 0 : index
    %c0_0 = arith.constant 0 : index
    %c0_1 = arith.constant 0 : index
    %0 = vector.load %arg0[%c0, %c0_0, %c0_1] : memref<2x8x64xf32, #tpu.memory_space<vmem>>, vector<2x8x64xf32>
    %1 = vector.shape_cast %0 : vector<2x8x64xf32> to vector<16x64xf32>
    %c0_2 = arith.constant 0 : index
    %c0_3 = arith.constant 0 : index
    %c0_4 = arith.constant 0 : index
    %2 = vector.load %arg1[%c0_2, %c0_3, %c0_4] : memref<2x8x64xf32, #tpu.memory_space<vmem>>, vector<2x8x64xf32>
    %3 = vector.shape_cast %2 : vector<2x8x64xf32> to vector<16x64xf32>
    %4 = tpu.iota {dimensions = array<i32: 0>} : vector<8x8xi32>
    %5 = tpu.iota {dimensions = array<i32: 1>} : vector<8x8xi32>
    %6 = arith.cmpi sgt, %5, %4 : vector<8x8xi32>
    %cst = arith.constant -1.000000e+30 : f32
    %cst_5 = arith.constant 0.000000e+00 : f32
    %7 = vector.broadcast %cst : f32 to vector<8x8xf32>
    %8 = vector.broadcast %cst_5 : f32 to vector<8x8xf32>
    %9 = arith.select %6, %7, %8 : vector<8x8xi1>, vector<8x8xf32>
    %c0_6 = arith.constant 0 : index
    %c0_7 = arith.constant 0 : index
    %10 = vector.load %arg2[%c0_6, %c0_7] : memref<64x192xf32, #tpu.memory_space<vmem>>, vector<64x192xf32>
    %c0_8 = arith.constant 0 : index
    %c0_9 = arith.constant 0 : index
    %11 = vector.load %arg3[%c0_8, %c0_9] : memref<1x192xf32, #tpu.memory_space<vmem>>, vector<1x192xf32>
    %c0_10 = arith.constant 0 : index
    %c0_11 = arith.constant 0 : index
    %12 = vector.load %arg4[%c0_10, %c0_11] : memref<64x64xf32, #tpu.memory_space<vmem>>, vector<64x64xf32>
    %c0_12 = arith.constant 0 : index
    %c0_13 = arith.constant 0 : index
    %13 = vector.load %arg5[%c0_12, %c0_13] : memref<1x64xf32, #tpu.memory_space<vmem>>, vector<1x64xf32>
    %cst_14 = arith.constant dense<0.000000e+00> : vector<16x192xf32>
    %14 = tpu.matmul %1, %10, %cst_14 {dimension_numbers = #tpu.dot_dimension_numbers<[1], [0], [0], [1], [0, 0, 1, 1], [], []>} : vector<16x64xf32>, vector<64x192xf32>, vector<16x192xf32> -> vector<16x192xf32>
    %15 = vector.broadcast %11 : vector<1x192xf32> to vector<16x192xf32>
    %16 = arith.addf %14, %15 : vector<16x192xf32>
    %17 = vector.extract_strided_slice %16 {offsets = [0, 0], sizes = [16, 64], strides = [1, 1]} : vector<16x192xf32> to vector<16x64xf32>
    %18 = vector.extract_strided_slice %16 {offsets = [0, 64], sizes = [16, 64], strides = [1, 1]} : vector<16x192xf32> to vector<16x64xf32>
    %19 = vector.extract_strided_slice %16 {offsets = [0, 128], sizes = [16, 64], strides = [1, 1]} : vector<16x192xf32> to vector<16x64xf32>
    %20 = vector.shape_cast %17 : vector<16x64xf32> to vector<2x8x64xf32>
    %21 = vector.shape_cast %18 : vector<16x64xf32> to vector<2x8x64xf32>
    %22 = vector.shape_cast %19 : vector<16x64xf32> to vector<2x8x64xf32>
    %23 = vector.extract_strided_slice %20 {offsets = [0, 0, 0], sizes = [2, 8, 16], strides = [1, 1, 1]} : vector<2x8x64xf32> to vector<2x8x16xf32>
    %24 = vector.extract_strided_slice %21 {offsets = [0, 0, 0], sizes = [2, 8, 16], strides = [1, 1, 1]} : vector<2x8x64xf32> to vector<2x8x16xf32>
    "tpu.trace_start"() <{level = 10 : i32, message = "bqd,bkd->bqk"}> : () -> ()
    %cst_15 = arith.constant dense<0.000000e+00> : vector<2x8x8xf32>
    %25 = tpu.matmul %23, %24, %cst_15 {dimension_numbers = #tpu.dot_dimension_numbers<[2], [2], [1], [1], [0, 0, 0, 1, 1, 1], [0], [0]>} : vector<2x8x16xf32>, vector<2x8x16xf32>, vector<2x8x8xf32> -> vector<2x8x8xf32>
    "tpu.trace_stop"() : () -> ()
    %26 = vector.shape_cast %9 : vector<8x8xf32> to vector<1x8x8xf32>
    %27 = vector.broadcast %26 : vector<1x8x8xf32> to vector<2x8x8xf32>
    %28 = arith.addf %25, %27 : vector<2x8x8xf32>
    %cst_16 = arith.constant dense<0xFF800000> : vector<2x8xf32>
    %29 = vector.multi_reduction <maximumf>, %28, %cst_16 [2] : vector<2x8x8xf32> to vector<2x8xf32>
    %30 = vector.shape_cast %29 : vector<2x8xf32> to vector<2x8x1xf32>
    %31 = vector.broadcast %30 : vector<2x8x1xf32> to vector<2x8x8xf32>
    %32 = arith.subf %28, %31 : vector<2x8x8xf32>
    %33 = math.exp %32 : vector<2x8x8xf32>
    %cst_17 = arith.constant dense<0.000000e+00> : vector<2x8xf32>
    %34 = vector.multi_reduction <add>, %33, %cst_17 [2] : vector<2x8x8xf32> to vector<2x8xf32>
    %35 = vector.shape_cast %34 : vector<2x8xf32> to vector<2x8x1xf32>
    %36 = tpu.reciprocal %35 {approx = true} : vector<2x8x1xf32> -> vector<2x8x1xf32>
    %37 = vector.broadcast %36 : vector<2x8x1xf32> to vector<2x8x8xf32>
    %38 = arith.mulf %33, %37 : vector<2x8x8xf32>
    %39 = vector.extract_strided_slice %22 {offsets = [0, 0, 0], sizes = [2, 8, 16], strides = [1, 1, 1]} : vector<2x8x64xf32> to vector<2x8x16xf32>
    "tpu.trace_start"() <{level = 10 : i32, message = "bqk,bkd->bqd"}> : () -> ()
    %cst_18 = arith.constant dense<0.000000e+00> : vector<2x8x16xf32>
    %40 = tpu.matmul %38, %39, %cst_18 {dimension_numbers = #tpu.dot_dimension_numbers<[2], [1], [1], [2], [0, 0, 0, 1, 1, 2], [0], [0]>} : vector<2x8x8xf32>, vector<2x8x16xf32>, vector<2x8x16xf32> -> vector<2x8x16xf32>
    "tpu.trace_stop"() : () -> ()
    %41 = vector.shape_cast %40 : vector<2x8x16xf32> to vector<16x16xf32>
    %42 = vector.extract_strided_slice %12 {offsets = [0, 0], sizes = [16, 64], strides = [1, 1]} : vector<64x64xf32> to vector<16x64xf32>
    %cst_19 = arith.constant dense<0.000000e+00> : vector<16x64xf32>
    %43 = tpu.matmul %41, %42, %cst_19 {dimension_numbers = #tpu.dot_dimension_numbers<[1], [0], [0], [1], [0, 0, 1, 1], [], []>} : vector<16x16xf32>, vector<16x64xf32>, vector<16x64xf32> -> vector<16x64xf32>
    %44 = vector.extract_strided_slice %20 {offsets = [0, 0, 16], sizes = [2, 8, 16], strides = [1, 1, 1]} : vector<2x8x64xf32> to vector<2x8x16xf32>
    %45 = vector.extract_strided_slice %21 {offsets = [0, 0, 16], sizes = [2, 8, 16], strides = [1, 1, 1]} : vector<2x8x64xf32> to vector<2x8x16xf32>
    "tpu.trace_start"() <{level = 10 : i32, message = "bqd,bkd->bqk"}> : () -> ()
    %cst_20 = arith.constant dense<0.000000e+00> : vector<2x8x8xf32>
    %46 = tpu.matmul %44, %45, %cst_20 {dimension_numbers = #tpu.dot_dimension_numbers<[2], [2], [1], [1], [0, 0, 0, 1, 1, 1], [0], [0]>} : vector<2x8x16xf32>, vector<2x8x16xf32>, vector<2x8x8xf32> -> vector<2x8x8xf32>
    "tpu.trace_stop"() : () -> ()
    %47 = vector.shape_cast %9 : vector<8x8xf32> to vector<1x8x8xf32>
    %48 = vector.broadcast %47 : vector<1x8x8xf32> to vector<2x8x8xf32>
    %49 = arith.addf %46, %48 : vector<2x8x8xf32>
    %cst_21 = arith.constant dense<0xFF800000> : vector<2x8xf32>
    %50 = vector.multi_reduction <maximumf>, %49, %cst_21 [2] : vector<2x8x8xf32> to vector<2x8xf32>
    %51 = vector.shape_cast %50 : vector<2x8xf32> to vector<2x8x1xf32>
    %52 = vector.broadcast %51 : vector<2x8x1xf32> to vector<2x8x8xf32>
    %53 = arith.subf %49, %52 : vector<2x8x8xf32>
    %54 = math.exp %53 : vector<2x8x8xf32>
    %cst_22 = arith.constant dense<0.000000e+00> : vector<2x8xf32>
    %55 = vector.multi_reduction <add>, %54, %cst_22 [2] : vector<2x8x8xf32> to vector<2x8xf32>
    %56 = vector.shape_cast %55 : vector<2x8xf32> to vector<2x8x1xf32>
    %57 = tpu.reciprocal %56 {approx = true} : vector<2x8x1xf32> -> vector<2x8x1xf32>
    %58 = vector.broadcast %57 : vector<2x8x1xf32> to vector<2x8x8xf32>
    %59 = arith.mulf %54, %58 : vector<2x8x8xf32>
    %60 = vector.extract_strided_slice %22 {offsets = [0, 0, 16], sizes = [2, 8, 16], strides = [1, 1, 1]} : vector<2x8x64xf32> to vector<2x8x16xf32>
    "tpu.trace_start"() <{level = 10 : i32, message = "bqk,bkd->bqd"}> : () -> ()
    %cst_23 = arith.constant dense<0.000000e+00> : vector<2x8x16xf32>
    %61 = tpu.matmul %59, %60, %cst_23 {dimension_numbers = #tpu.dot_dimension_numbers<[2], [1], [1], [2], [0, 0, 0, 1, 1, 2], [0], [0]>} : vector<2x8x8xf32>, vector<2x8x16xf32>, vector<2x8x16xf32> -> vector<2x8x16xf32>
    "tpu.trace_stop"() : () -> ()
    %62 = vector.shape_cast %61 : vector<2x8x16xf32> to vector<16x16xf32>
    %63 = vector.extract_strided_slice %12 {offsets = [16, 0], sizes = [16, 64], strides = [1, 1]} : vector<64x64xf32> to vector<16x64xf32>
    %cst_24 = arith.constant dense<0.000000e+00> : vector<16x64xf32>
    %64 = tpu.matmul %62, %63, %cst_24 {dimension_numbers = #tpu.dot_dimension_numbers<[1], [0], [0], [1], [0, 0, 1, 1], [], []>} : vector<16x16xf32>, vector<16x64xf32>, vector<16x64xf32> -> vector<16x64xf32>
    %65 = arith.addf %43, %64 : vector<16x64xf32>
    %66 = vector.extract_strided_slice %20 {offsets = [0, 0, 32], sizes = [2, 8, 16], strides = [1, 1, 1]} : vector<2x8x64xf32> to vector<2x8x16xf32>
    %67 = vector.extract_strided_slice %21 {offsets = [0, 0, 32], sizes = [2, 8, 16], strides = [1, 1, 1]} : vector<2x8x64xf32> to vector<2x8x16xf32>
    "tpu.trace_start"() <{level = 10 : i32, message = "bqd,bkd->bqk"}> : () -> ()
    %cst_25 = arith.constant dense<0.000000e+00> : vector<2x8x8xf32>
    %68 = tpu.matmul %66, %67, %cst_25 {dimension_numbers = #tpu.dot_dimension_numbers<[2], [2], [1], [1], [0, 0, 0, 1, 1, 1], [0], [0]>} : vector<2x8x16xf32>, vector<2x8x16xf32>, vector<2x8x8xf32> -> vector<2x8x8xf32>
    "tpu.trace_stop"() : () -> ()
    %69 = vector.shape_cast %9 : vector<8x8xf32> to vector<1x8x8xf32>
    %70 = vector.broadcast %69 : vector<1x8x8xf32> to vector<2x8x8xf32>
    %71 = arith.addf %68, %70 : vector<2x8x8xf32>
    %cst_26 = arith.constant dense<0xFF800000> : vector<2x8xf32>
    %72 = vector.multi_reduction <maximumf>, %71, %cst_26 [2] : vector<2x8x8xf32> to vector<2x8xf32>
    %73 = vector.shape_cast %72 : vector<2x8xf32> to vector<2x8x1xf32>
    %74 = vector.broadcast %73 : vector<2x8x1xf32> to vector<2x8x8xf32>
    %75 = arith.subf %71, %74 : vector<2x8x8xf32>
    %76 = math.exp %75 : vector<2x8x8xf32>
    %cst_27 = arith.constant dense<0.000000e+00> : vector<2x8xf32>
    %77 = vector.multi_reduction <add>, %76, %cst_27 [2] : vector<2x8x8xf32> to vector<2x8xf32>
    %78 = vector.shape_cast %77 : vector<2x8xf32> to vector<2x8x1xf32>
    %79 = tpu.reciprocal %78 {approx = true} : vector<2x8x1xf32> -> vector<2x8x1xf32>
    %80 = vector.broadcast %79 : vector<2x8x1xf32> to vector<2x8x8xf32>
    %81 = arith.mulf %76, %80 : vector<2x8x8xf32>
    %82 = vector.extract_strided_slice %22 {offsets = [0, 0, 32], sizes = [2, 8, 16], strides = [1, 1, 1]} : vector<2x8x64xf32> to vector<2x8x16xf32>
    "tpu.trace_start"() <{level = 10 : i32, message = "bqk,bkd->bqd"}> : () -> ()
    %cst_28 = arith.constant dense<0.000000e+00> : vector<2x8x16xf32>
    %83 = tpu.matmul %81, %82, %cst_28 {dimension_numbers = #tpu.dot_dimension_numbers<[2], [1], [1], [2], [0, 0, 0, 1, 1, 2], [0], [0]>} : vector<2x8x8xf32>, vector<2x8x16xf32>, vector<2x8x16xf32> -> vector<2x8x16xf32>
    "tpu.trace_stop"() : () -> ()
    %84 = vector.shape_cast %83 : vector<2x8x16xf32> to vector<16x16xf32>
    %85 = vector.extract_strided_slice %12 {offsets = [32, 0], sizes = [16, 64], strides = [1, 1]} : vector<64x64xf32> to vector<16x64xf32>
    %cst_29 = arith.constant dense<0.000000e+00> : vector<16x64xf32>
    %86 = tpu.matmul %84, %85, %cst_29 {dimension_numbers = #tpu.dot_dimension_numbers<[1], [0], [0], [1], [0, 0, 1, 1], [], []>} : vector<16x16xf32>, vector<16x64xf32>, vector<16x64xf32> -> vector<16x64xf32>
    %87 = arith.addf %65, %86 : vector<16x64xf32>
    %88 = vector.extract_strided_slice %20 {offsets = [0, 0, 48], sizes = [2, 8, 16], strides = [1, 1, 1]} : vector<2x8x64xf32> to vector<2x8x16xf32>
    %89 = vector.extract_strided_slice %21 {offsets = [0, 0, 48], sizes = [2, 8, 16], strides = [1, 1, 1]} : vector<2x8x64xf32> to vector<2x8x16xf32>
    "tpu.trace_start"() <{level = 10 : i32, message = "bqd,bkd->bqk"}> : () -> ()
    %cst_30 = arith.constant dense<0.000000e+00> : vector<2x8x8xf32>
    %90 = tpu.matmul %88, %89, %cst_30 {dimension_numbers = #tpu.dot_dimension_numbers<[2], [2], [1], [1], [0, 0, 0, 1, 1, 1], [0], [0]>} : vector<2x8x16xf32>, vector<2x8x16xf32>, vector<2x8x8xf32> -> vector<2x8x8xf32>
    "tpu.trace_stop"() : () -> ()
    %91 = vector.shape_cast %9 : vector<8x8xf32> to vector<1x8x8xf32>
    %92 = vector.broadcast %91 : vector<1x8x8xf32> to vector<2x8x8xf32>
    %93 = arith.addf %90, %92 : vector<2x8x8xf32>
    %cst_31 = arith.constant dense<0xFF800000> : vector<2x8xf32>
    %94 = vector.multi_reduction <maximumf>, %93, %cst_31 [2] : vector<2x8x8xf32> to vector<2x8xf32>
    %95 = vector.shape_cast %94 : vector<2x8xf32> to vector<2x8x1xf32>
    %96 = vector.broadcast %95 : vector<2x8x1xf32> to vector<2x8x8xf32>
    %97 = arith.subf %93, %96 : vector<2x8x8xf32>
    %98 = math.exp %97 : vector<2x8x8xf32>
    %cst_32 = arith.constant dense<0.000000e+00> : vector<2x8xf32>
    %99 = vector.multi_reduction <add>, %98, %cst_32 [2] : vector<2x8x8xf32> to vector<2x8xf32>
    %100 = vector.shape_cast %99 : vector<2x8xf32> to vector<2x8x1xf32>
    %101 = tpu.reciprocal %100 {approx = true} : vector<2x8x1xf32> -> vector<2x8x1xf32>
    %102 = vector.broadcast %101 : vector<2x8x1xf32> to vector<2x8x8xf32>
    %103 = arith.mulf %98, %102 : vector<2x8x8xf32>
    %104 = vector.extract_strided_slice %22 {offsets = [0, 0, 48], sizes = [2, 8, 16], strides = [1, 1, 1]} : vector<2x8x64xf32> to vector<2x8x16xf32>
    "tpu.trace_start"() <{level = 10 : i32, message = "bqk,bkd->bqd"}> : () -> ()
    %cst_33 = arith.constant dense<0.000000e+00> : vector<2x8x16xf32>
    %105 = tpu.matmul %103, %104, %cst_33 {dimension_numbers = #tpu.dot_dimension_numbers<[2], [1], [1], [2], [0, 0, 0, 1, 1, 2], [0], [0]>} : vector<2x8x8xf32>, vector<2x8x16xf32>, vector<2x8x16xf32> -> vector<2x8x16xf32>
    "tpu.trace_stop"() : () -> ()
    %106 = vector.shape_cast %105 : vector<2x8x16xf32> to vector<16x16xf32>
    %107 = vector.extract_strided_slice %12 {offsets = [48, 0], sizes = [16, 64], strides = [1, 1]} : vector<64x64xf32> to vector<16x64xf32>
    %cst_34 = arith.constant dense<0.000000e+00> : vector<16x64xf32>
    %108 = tpu.matmul %106, %107, %cst_34 {dimension_numbers = #tpu.dot_dimension_numbers<[1], [0], [0], [1], [0, 0, 1, 1], [], []>} : vector<16x16xf32>, vector<16x64xf32>, vector<16x64xf32> -> vector<16x64xf32>
    %109 = arith.addf %87, %108 : vector<16x64xf32>
    %110 = vector.broadcast %13 : vector<1x64xf32> to vector<16x64xf32>
    %111 = arith.addf %109, %110 : vector<16x64xf32>
    %112 = arith.addf %111, %1 : vector<16x64xf32>
    %c0_35 = arith.constant 0 : index
    %c0_36 = arith.constant 0 : index
    %113 = vector.load %arg6[%c0_35, %c0_36] : memref<1x64xf32, #tpu.memory_space<vmem>>, vector<1x64xf32>
    %c0_37 = arith.constant 0 : index
    %c0_38 = arith.constant 0 : index
    %114 = vector.load %arg7[%c0_37, %c0_38] : memref<1x64xf32, #tpu.memory_space<vmem>>, vector<1x64xf32>
    %cst_39 = arith.constant dense<0.000000e+00> : vector<16xf32>
    %115 = vector.multi_reduction <add>, %112, %cst_39 [1] : vector<16x64xf32> to vector<16xf32>
    %116 = vector.shape_cast %115 : vector<16xf32> to vector<16x1xf32>
    %cst_40 = arith.constant 6.400000e+01 : f32
    %117 = vector.broadcast %cst_40 : f32 to vector<16x1xf32>
    %118 = arith.divf %116, %117 : vector<16x1xf32>
    %119 = vector.broadcast %118 : vector<16x1xf32> to vector<16x64xf32>
    %120 = arith.subf %112, %119 : vector<16x64xf32>
    %121 = arith.mulf %120, %120 : vector<16x64xf32>
    %cst_41 = arith.constant dense<0.000000e+00> : vector<16xf32>
    %122 = vector.multi_reduction <add>, %121, %cst_41 [1] : vector<16x64xf32> to vector<16xf32>
    %123 = vector.shape_cast %122 : vector<16xf32> to vector<16x1xf32>
    %cst_42 = arith.constant 6.400000e+01 : f32
    %124 = vector.broadcast %cst_42 : f32 to vector<16x1xf32>
    %125 = arith.divf %123, %124 : vector<16x1xf32>
    %126 = vector.broadcast %118 : vector<16x1xf32> to vector<16x64xf32>
    %127 = arith.subf %112, %126 : vector<16x64xf32>
    %cst_43 = arith.constant 9.99999974E-6 : f32
    %128 = vector.broadcast %cst_43 : f32 to vector<16x1xf32>
    %129 = arith.addf %125, %128 : vector<16x1xf32>
    %130 = math.rsqrt %129 : vector<16x1xf32>
    %131 = vector.broadcast %130 : vector<16x1xf32> to vector<16x64xf32>
    %132 = arith.mulf %127, %131 : vector<16x64xf32>
    %133 = vector.broadcast %113 : vector<1x64xf32> to vector<16x64xf32>
    %134 = arith.mulf %132, %133 : vector<16x64xf32>
    %135 = vector.broadcast %114 : vector<1x64xf32> to vector<16x64xf32>
    %136 = arith.addf %134, %135 : vector<16x64xf32>
    %c0_44 = arith.constant 0 : index
    %c0_45 = arith.constant 0 : index
    %137 = vector.load %arg8[%c0_44, %c0_45] : memref<64x192xf32, #tpu.memory_space<vmem>>, vector<64x192xf32>
    %c0_46 = arith.constant 0 : index
    %c0_47 = arith.constant 0 : index
    %138 = vector.load %arg9[%c0_46, %c0_47] : memref<1x192xf32, #tpu.memory_space<vmem>>, vector<1x192xf32>
    %c0_48 = arith.constant 0 : index
    %c0_49 = arith.constant 0 : index
    %139 = vector.load %arg10[%c0_48, %c0_49] : memref<64x64xf32, #tpu.memory_space<vmem>>, vector<64x64xf32>
    %c0_50 = arith.constant 0 : index
    %c0_51 = arith.constant 0 : index
    %140 = vector.load %arg11[%c0_50, %c0_51] : memref<1x64xf32, #tpu.memory_space<vmem>>, vector<1x64xf32>
    %141 = vector.extract_strided_slice %137 {offsets = [0, 0], sizes = [64, 64], strides = [1, 1]} : vector<64x192xf32> to vector<64x64xf32>
    %cst_52 = arith.constant dense<0.000000e+00> : vector<16x64xf32>
    %142 = tpu.matmul %136, %141, %cst_52 {dimension_numbers = #tpu.dot_dimension_numbers<[1], [0], [0], [1], [0, 0, 1, 1], [], []>} : vector<16x64xf32>, vector<64x64xf32>, vector<16x64xf32> -> vector<16x64xf32>
    %143 = vector.extract_strided_slice %138 {offsets = [0, 0], sizes = [1, 64], strides = [1, 1]} : vector<1x192xf32> to vector<1x64xf32>
    %144 = vector.broadcast %143 : vector<1x64xf32> to vector<16x64xf32>
    %145 = arith.addf %142, %144 : vector<16x64xf32>
    %146 = vector.extract_strided_slice %137 {offsets = [0, 64], sizes = [64, 128], strides = [1, 1]} : vector<64x192xf32> to vector<64x128xf32>
    %cst_53 = arith.constant dense<0.000000e+00> : vector<16x128xf32>
    %147 = tpu.matmul %3, %146, %cst_53 {dimension_numbers = #tpu.dot_dimension_numbers<[1], [0], [0], [1], [0, 0, 1, 1], [], []>} : vector<16x64xf32>, vector<64x128xf32>, vector<16x128xf32> -> vector<16x128xf32>
    %148 = vector.extract_strided_slice %138 {offsets = [0, 64], sizes = [1, 128], strides = [1, 1]} : vector<1x192xf32> to vector<1x128xf32>
    %149 = vector.broadcast %148 : vector<1x128xf32> to vector<16x128xf32>
    %150 = arith.addf %147, %149 : vector<16x128xf32>
    %151 = vector.extract_strided_slice %150 {offsets = [0, 0], sizes = [16, 64], strides = [1, 1]} : vector<16x128xf32> to vector<16x64xf32>
    %152 = vector.extract_strided_slice %150 {offsets = [0, 64], sizes = [16, 64], strides = [1, 1]} : vector<16x128xf32> to vector<16x64xf32>
    %153 = vector.shape_cast %145 : vector<16x64xf32> to vector<2x8x64xf32>
    %154 = vector.shape_cast %151 : vector<16x64xf32> to vector<2x8x64xf32>
    %155 = vector.shape_cast %152 : vector<16x64xf32> to vector<2x8x64xf32>
    %156 = vector.extract_strided_slice %153 {offsets = [0, 0, 0], sizes = [2, 8, 16], strides = [1, 1, 1]} : vector<2x8x64xf32> to vector<2x8x16xf32>
    %157 = vector.extract_strided_slice %154 {offsets = [0, 0, 0], sizes = [2, 8, 16], strides = [1, 1, 1]} : vector<2x8x64xf32> to vector<2x8x16xf32>
    "tpu.trace_start"() <{level = 10 : i32, message = "bqd,bkd->bqk"}> : () -> ()
    %cst_54 = arith.constant dense<0.000000e+00> : vector<2x8x8xf32>
    %158 = tpu.matmul %156, %157, %cst_54 {dimension_numbers = #tpu.dot_dimension_numbers<[2], [2], [1], [1], [0, 0, 0, 1, 1, 1], [0], [0]>} : vector<2x8x16xf32>, vector<2x8x16xf32>, vector<2x8x8xf32> -> vector<2x8x8xf32>
    "tpu.trace_stop"() : () -> ()
    %cst_55 = arith.constant dense<0xFF800000> : vector<2x8xf32>
    %159 = vector.multi_reduction <maximumf>, %158, %cst_55 [2] : vector<2x8x8xf32> to vector<2x8xf32>
    %160 = vector.shape_cast %159 : vector<2x8xf32> to vector<2x8x1xf32>
    %161 = vector.broadcast %160 : vector<2x8x1xf32> to vector<2x8x8xf32>
    %162 = arith.subf %158, %161 : vector<2x8x8xf32>
    %163 = math.exp %162 : vector<2x8x8xf32>
    %cst_56 = arith.constant dense<0.000000e+00> : vector<2x8xf32>
    %164 = vector.multi_reduction <add>, %163, %cst_56 [2] : vector<2x8x8xf32> to vector<2x8xf32>
    %165 = vector.shape_cast %164 : vector<2x8xf32> to vector<2x8x1xf32>
    %166 = tpu.reciprocal %165 {approx = true} : vector<2x8x1xf32> -> vector<2x8x1xf32>
    %167 = vector.broadcast %166 : vector<2x8x1xf32> to vector<2x8x8xf32>
    %168 = arith.mulf %163, %167 : vector<2x8x8xf32>
    %169 = vector.extract_strided_slice %155 {offsets = [0, 0, 0], sizes = [2, 8, 16], strides = [1, 1, 1]} : vector<2x8x64xf32> to vector<2x8x16xf32>
    "tpu.trace_start"() <{level = 10 : i32, message = "bqk,bkd->bqd"}> : () -> ()
    %cst_57 = arith.constant dense<0.000000e+00> : vector<2x8x16xf32>
    %170 = tpu.matmul %168, %169, %cst_57 {dimension_numbers = #tpu.dot_dimension_numbers<[2], [1], [1], [2], [0, 0, 0, 1, 1, 2], [0], [0]>} : vector<2x8x8xf32>, vector<2x8x16xf32>, vector<2x8x16xf32> -> vector<2x8x16xf32>
    "tpu.trace_stop"() : () -> ()
    %171 = vector.shape_cast %170 : vector<2x8x16xf32> to vector<16x16xf32>
    %172 = vector.extract_strided_slice %139 {offsets = [0, 0], sizes = [16, 64], strides = [1, 1]} : vector<64x64xf32> to vector<16x64xf32>
    %cst_58 = arith.constant dense<0.000000e+00> : vector<16x64xf32>
    %173 = tpu.matmul %171, %172, %cst_58 {dimension_numbers = #tpu.dot_dimension_numbers<[1], [0], [0], [1], [0, 0, 1, 1], [], []>} : vector<16x16xf32>, vector<16x64xf32>, vector<16x64xf32> -> vector<16x64xf32>
    %174 = vector.extract_strided_slice %153 {offsets = [0, 0, 16], sizes = [2, 8, 16], strides = [1, 1, 1]} : vector<2x8x64xf32> to vector<2x8x16xf32>
    %175 = vector.extract_strided_slice %154 {offsets = [0, 0, 16], sizes = [2, 8, 16], strides = [1, 1, 1]} : vector<2x8x64xf32> to vector<2x8x16xf32>
    "tpu.trace_start"() <{level = 10 : i32, message = "bqd,bkd->bqk"}> : () -> ()
    %cst_59 = arith.constant dense<0.000000e+00> : vector<2x8x8xf32>
    %176 = tpu.matmul %174, %175, %cst_59 {dimension_numbers = #tpu.dot_dimension_numbers<[2], [2], [1], [1], [0, 0, 0, 1, 1, 1], [0], [0]>} : vector<2x8x16xf32>, vector<2x8x16xf32>, vector<2x8x8xf32> -> vector<2x8x8xf32>
    "tpu.trace_stop"() : () -> ()
    %cst_60 = arith.constant dense<0xFF800000> : vector<2x8xf32>
    %177 = vector.multi_reduction <maximumf>, %176, %cst_60 [2] : vector<2x8x8xf32> to vector<2x8xf32>
    %178 = vector.shape_cast %177 : vector<2x8xf32> to vector<2x8x1xf32>
    %179 = vector.broadcast %178 : vector<2x8x1xf32> to vector<2x8x8xf32>
    %180 = arith.subf %176, %179 : vector<2x8x8xf32>
    %181 = math.exp %180 : vector<2x8x8xf32>
    %cst_61 = arith.constant dense<0.000000e+00> : vector<2x8xf32>
    %182 = vector.multi_reduction <add>, %181, %cst_61 [2] : vector<2x8x8xf32> to vector<2x8xf32>
    %183 = vector.shape_cast %182 : vector<2x8xf32> to vector<2x8x1xf32>
    %184 = tpu.reciprocal %183 {approx = true} : vector<2x8x1xf32> -> vector<2x8x1xf32>
    %185 = vector.broadcast %184 : vector<2x8x1xf32> to vector<2x8x8xf32>
    %186 = arith.mulf %181, %185 : vector<2x8x8xf32>
    %187 = vector.extract_strided_slice %155 {offsets = [0, 0, 16], sizes = [2, 8, 16], strides = [1, 1, 1]} : vector<2x8x64xf32> to vector<2x8x16xf32>
    "tpu.trace_start"() <{level = 10 : i32, message = "bqk,bkd->bqd"}> : () -> ()
    %cst_62 = arith.constant dense<0.000000e+00> : vector<2x8x16xf32>
    %188 = tpu.matmul %186, %187, %cst_62 {dimension_numbers = #tpu.dot_dimension_numbers<[2], [1], [1], [2], [0, 0, 0, 1, 1, 2], [0], [0]>} : vector<2x8x8xf32>, vector<2x8x16xf32>, vector<2x8x16xf32> -> vector<2x8x16xf32>
    "tpu.trace_stop"() : () -> ()
    %189 = vector.shape_cast %188 : vector<2x8x16xf32> to vector<16x16xf32>
    %190 = vector.extract_strided_slice %139 {offsets = [16, 0], sizes = [16, 64], strides = [1, 1]} : vector<64x64xf32> to vector<16x64xf32>
    %cst_63 = arith.constant dense<0.000000e+00> : vector<16x64xf32>
    %191 = tpu.matmul %189, %190, %cst_63 {dimension_numbers = #tpu.dot_dimension_numbers<[1], [0], [0], [1], [0, 0, 1, 1], [], []>} : vector<16x16xf32>, vector<16x64xf32>, vector<16x64xf32> -> vector<16x64xf32>
    %192 = arith.addf %173, %191 : vector<16x64xf32>
    %193 = vector.extract_strided_slice %153 {offsets = [0, 0, 32], sizes = [2, 8, 16], strides = [1, 1, 1]} : vector<2x8x64xf32> to vector<2x8x16xf32>
    %194 = vector.extract_strided_slice %154 {offsets = [0, 0, 32], sizes = [2, 8, 16], strides = [1, 1, 1]} : vector<2x8x64xf32> to vector<2x8x16xf32>
    "tpu.trace_start"() <{level = 10 : i32, message = "bqd,bkd->bqk"}> : () -> ()
    %cst_64 = arith.constant dense<0.000000e+00> : vector<2x8x8xf32>
    %195 = tpu.matmul %193, %194, %cst_64 {dimension_numbers = #tpu.dot_dimension_numbers<[2], [2], [1], [1], [0, 0, 0, 1, 1, 1], [0], [0]>} : vector<2x8x16xf32>, vector<2x8x16xf32>, vector<2x8x8xf32> -> vector<2x8x8xf32>
    "tpu.trace_stop"() : () -> ()
    %cst_65 = arith.constant dense<0xFF800000> : vector<2x8xf32>
    %196 = vector.multi_reduction <maximumf>, %195, %cst_65 [2] : vector<2x8x8xf32> to vector<2x8xf32>
    %197 = vector.shape_cast %196 : vector<2x8xf32> to vector<2x8x1xf32>
    %198 = vector.broadcast %197 : vector<2x8x1xf32> to vector<2x8x8xf32>
    %199 = arith.subf %195, %198 : vector<2x8x8xf32>
    %200 = math.exp %199 : vector<2x8x8xf32>
    %cst_66 = arith.constant dense<0.000000e+00> : vector<2x8xf32>
    %201 = vector.multi_reduction <add>, %200, %cst_66 [2] : vector<2x8x8xf32> to vector<2x8xf32>
    %202 = vector.shape_cast %201 : vector<2x8xf32> to vector<2x8x1xf32>
    %203 = tpu.reciprocal %202 {approx = true} : vector<2x8x1xf32> -> vector<2x8x1xf32>
    %204 = vector.broadcast %203 : vector<2x8x1xf32> to vector<2x8x8xf32>
    %205 = arith.mulf %200, %204 : vector<2x8x8xf32>
    %206 = vector.extract_strided_slice %155 {offsets = [0, 0, 32], sizes = [2, 8, 16], strides = [1, 1, 1]} : vector<2x8x64xf32> to vector<2x8x16xf32>
    "tpu.trace_start"() <{level = 10 : i32, message = "bqk,bkd->bqd"}> : () -> ()
    %cst_67 = arith.constant dense<0.000000e+00> : vector<2x8x16xf32>
    %207 = tpu.matmul %205, %206, %cst_67 {dimension_numbers = #tpu.dot_dimension_numbers<[2], [1], [1], [2], [0, 0, 0, 1, 1, 2], [0], [0]>} : vector<2x8x8xf32>, vector<2x8x16xf32>, vector<2x8x16xf32> -> vector<2x8x16xf32>
    "tpu.trace_stop"() : () -> ()
    %208 = vector.shape_cast %207 : vector<2x8x16xf32> to vector<16x16xf32>
    %209 = vector.extract_strided_slice %139 {offsets = [32, 0], sizes = [16, 64], strides = [1, 1]} : vector<64x64xf32> to vector<16x64xf32>
    %cst_68 = arith.constant dense<0.000000e+00> : vector<16x64xf32>
    %210 = tpu.matmul %208, %209, %cst_68 {dimension_numbers = #tpu.dot_dimension_numbers<[1], [0], [0], [1], [0, 0, 1, 1], [], []>} : vector<16x16xf32>, vector<16x64xf32>, vector<16x64xf32> -> vector<16x64xf32>
    %211 = arith.addf %192, %210 : vector<16x64xf32>
    %212 = vector.extract_strided_slice %153 {offsets = [0, 0, 48], sizes = [2, 8, 16], strides = [1, 1, 1]} : vector<2x8x64xf32> to vector<2x8x16xf32>
    %213 = vector.extract_strided_slice %154 {offsets = [0, 0, 48], sizes = [2, 8, 16], strides = [1, 1, 1]} : vector<2x8x64xf32> to vector<2x8x16xf32>
    "tpu.trace_start"() <{level = 10 : i32, message = "bqd,bkd->bqk"}> : () -> ()
    %cst_69 = arith.constant dense<0.000000e+00> : vector<2x8x8xf32>
    %214 = tpu.matmul %212, %213, %cst_69 {dimension_numbers = #tpu.dot_dimension_numbers<[2], [2], [1], [1], [0, 0, 0, 1, 1, 1], [0], [0]>} : vector<2x8x16xf32>, vector<2x8x16xf32>, vector<2x8x8xf32> -> vector<2x8x8xf32>
    "tpu.trace_stop"() : () -> ()
    %cst_70 = arith.constant dense<0xFF800000> : vector<2x8xf32>
    %215 = vector.multi_reduction <maximumf>, %214, %cst_70 [2] : vector<2x8x8xf32> to vector<2x8xf32>
    %216 = vector.shape_cast %215 : vector<2x8xf32> to vector<2x8x1xf32>
    %217 = vector.broadcast %216 : vector<2x8x1xf32> to vector<2x8x8xf32>
    %218 = arith.subf %214, %217 : vector<2x8x8xf32>
    %219 = math.exp %218 : vector<2x8x8xf32>
    %cst_71 = arith.constant dense<0.000000e+00> : vector<2x8xf32>
    %220 = vector.multi_reduction <add>, %219, %cst_71 [2] : vector<2x8x8xf32> to vector<2x8xf32>
    %221 = vector.shape_cast %220 : vector<2x8xf32> to vector<2x8x1xf32>
    %222 = tpu.reciprocal %221 {approx = true} : vector<2x8x1xf32> -> vector<2x8x1xf32>
    %223 = vector.broadcast %222 : vector<2x8x1xf32> to vector<2x8x8xf32>
    %224 = arith.mulf %219, %223 : vector<2x8x8xf32>
    %225 = vector.extract_strided_slice %155 {offsets = [0, 0, 48], sizes = [2, 8, 16], strides = [1, 1, 1]} : vector<2x8x64xf32> to vector<2x8x16xf32>
    "tpu.trace_start"() <{level = 10 : i32, message = "bqk,bkd->bqd"}> : () -> ()
    %cst_72 = arith.constant dense<0.000000e+00> : vector<2x8x16xf32>
    %226 = tpu.matmul %224, %225, %cst_72 {dimension_numbers = #tpu.dot_dimension_numbers<[2], [1], [1], [2], [0, 0, 0, 1, 1, 2], [0], [0]>} : vector<2x8x8xf32>, vector<2x8x16xf32>, vector<2x8x16xf32> -> vector<2x8x16xf32>
    "tpu.trace_stop"() : () -> ()
    %227 = vector.shape_cast %226 : vector<2x8x16xf32> to vector<16x16xf32>
    %228 = vector.extract_strided_slice %139 {offsets = [48, 0], sizes = [16, 64], strides = [1, 1]} : vector<64x64xf32> to vector<16x64xf32>
    %cst_73 = arith.constant dense<0.000000e+00> : vector<16x64xf32>
    %229 = tpu.matmul %227, %228, %cst_73 {dimension_numbers = #tpu.dot_dimension_numbers<[1], [0], [0], [1], [0, 0, 1, 1], [], []>} : vector<16x16xf32>, vector<16x64xf32>, vector<16x64xf32> -> vector<16x64xf32>
    %230 = arith.addf %211, %229 : vector<16x64xf32>
    %231 = vector.broadcast %140 : vector<1x64xf32> to vector<16x64xf32>
    %232 = arith.addf %230, %231 : vector<16x64xf32>
    %233 = arith.addf %232, %136 : vector<16x64xf32>
    %c0_74 = arith.constant 0 : index
    %c0_75 = arith.constant 0 : index
    %234 = vector.load %arg12[%c0_74, %c0_75] : memref<1x64xf32, #tpu.memory_space<vmem>>, vector<1x64xf32>
    %c0_76 = arith.constant 0 : index
    %c0_77 = arith.constant 0 : index
    %235 = vector.load %arg13[%c0_76, %c0_77] : memref<1x64xf32, #tpu.memory_space<vmem>>, vector<1x64xf32>
    %cst_78 = arith.constant dense<0.000000e+00> : vector<16xf32>
    %236 = vector.multi_reduction <add>, %233, %cst_78 [1] : vector<16x64xf32> to vector<16xf32>
    %237 = vector.shape_cast %236 : vector<16xf32> to vector<16x1xf32>
    %cst_79 = arith.constant 6.400000e+01 : f32
    %238 = vector.broadcast %cst_79 : f32 to vector<16x1xf32>
    %239 = arith.divf %237, %238 : vector<16x1xf32>
    %240 = vector.broadcast %239 : vector<16x1xf32> to vector<16x64xf32>
    %241 = arith.subf %233, %240 : vector<16x64xf32>
    %242 = arith.mulf %241, %241 : vector<16x64xf32>
    %cst_80 = arith.constant dense<0.000000e+00> : vector<16xf32>
    %243 = vector.multi_reduction <add>, %242, %cst_80 [1] : vector<16x64xf32> to vector<16xf32>
    %244 = vector.shape_cast %243 : vector<16xf32> to vector<16x1xf32>
    %cst_81 = arith.constant 6.400000e+01 : f32
    %245 = vector.broadcast %cst_81 : f32 to vector<16x1xf32>
    %246 = arith.divf %244, %245 : vector<16x1xf32>
    %247 = vector.broadcast %239 : vector<16x1xf32> to vector<16x64xf32>
    %248 = arith.subf %233, %247 : vector<16x64xf32>
    %cst_82 = arith.constant 9.99999974E-6 : f32
    %249 = vector.broadcast %cst_82 : f32 to vector<16x1xf32>
    %250 = arith.addf %246, %249 : vector<16x1xf32>
    %251 = math.rsqrt %250 : vector<16x1xf32>
    %252 = vector.broadcast %251 : vector<16x1xf32> to vector<16x64xf32>
    %253 = arith.mulf %248, %252 : vector<16x64xf32>
    %254 = vector.broadcast %234 : vector<1x64xf32> to vector<16x64xf32>
    %255 = arith.mulf %253, %254 : vector<16x64xf32>
    %256 = vector.broadcast %235 : vector<1x64xf32> to vector<16x64xf32>
    %257 = arith.addf %255, %256 : vector<16x64xf32>
    %c0_83 = arith.constant 0 : index
    %c0_84 = arith.constant 0 : index
    %258 = vector.load %arg14[%c0_83, %c0_84] : memref<64x256xf32, #tpu.memory_space<vmem>>, vector<64x256xf32>
    %cst_85 = arith.constant dense<0.000000e+00> : vector<16x256xf32>
    %259 = tpu.matmul %257, %258, %cst_85 {dimension_numbers = #tpu.dot_dimension_numbers<[1], [0], [0], [1], [0, 0, 1, 1], [], []>} : vector<16x64xf32>, vector<64x256xf32>, vector<16x256xf32> -> vector<16x256xf32>
    %c0_86 = arith.constant 0 : index
    %c0_87 = arith.constant 0 : index
    %260 = vector.load %arg15[%c0_86, %c0_87] : memref<1x256xf32, #tpu.memory_space<vmem>>, vector<1x256xf32>
    %261 = vector.broadcast %260 : vector<1x256xf32> to vector<16x256xf32>
    %262 = arith.addf %259, %261 : vector<16x256xf32>
    %cst_88 = arith.constant 0.000000e+00 : f32
    %263 = vector.broadcast %cst_88 : f32 to vector<16x256xf32>
    %264 = arith.cmpf ogt, %262, %263 : vector<16x256xf32>
    %265 = math.exp %262 : vector<16x256xf32>
    %cst_89 = arith.constant 1.000000e+00 : f32
    %266 = vector.broadcast %cst_89 : f32 to vector<16x256xf32>
    %267 = arith.subf %265, %266 : vector<16x256xf32>
    %268 = arith.select %264, %262, %267 : vector<16x256xi1>, vector<16x256xf32>
    %c0_90 = arith.constant 0 : index
    %c0_91 = arith.constant 0 : index
    %269 = vector.load %arg16[%c0_90, %c0_91] : memref<256x64xf32, #tpu.memory_space<vmem>>, vector<256x64xf32>
    %cst_92 = arith.constant dense<0.000000e+00> : vector<16x64xf32>
    %270 = tpu.matmul %268, %269, %cst_92 {dimension_numbers = #tpu.dot_dimension_numbers<[1], [0], [0], [1], [0, 0, 1, 1], [], []>} : vector<16x256xf32>, vector<256x64xf32>, vector<16x64xf32> -> vector<16x64xf32>
    %c0_93 = arith.constant 0 : index
    %c0_94 = arith.constant 0 : index
    %271 = vector.load %arg17[%c0_93, %c0_94] : memref<1x64xf32, #tpu.memory_space<vmem>>, vector<1x64xf32>
    %272 = vector.broadcast %271 : vector<1x64xf32> to vector<16x64xf32>
    %273 = arith.addf %270, %272 : vector<16x64xf32>
    %274 = arith.addf %273, %257 : vector<16x64xf32>
    %c0_95 = arith.constant 0 : index
    %c0_96 = arith.constant 0 : index
    %275 = vector.load %arg18[%c0_95, %c0_96] : memref<1x64xf32, #tpu.memory_space<vmem>>, vector<1x64xf32>
    %c0_97 = arith.constant 0 : index
    %c0_98 = arith.constant 0 : index
    %276 = vector.load %arg19[%c0_97, %c0_98] : memref<1x64xf32, #tpu.memory_space<vmem>>, vector<1x64xf32>
    %cst_99 = arith.constant dense<0.000000e+00> : vector<16xf32>
    %277 = vector.multi_reduction <add>, %274, %cst_99 [1] : vector<16x64xf32> to vector<16xf32>
    %278 = vector.shape_cast %277 : vector<16xf32> to vector<16x1xf32>
    %cst_100 = arith.constant 6.400000e+01 : f32
    %279 = vector.broadcast %cst_100 : f32 to vector<16x1xf32>
    %280 = arith.divf %278, %279 : vector<16x1xf32>
    %281 = vector.broadcast %280 : vector<16x1xf32> to vector<16x64xf32>
    %282 = arith.subf %274, %281 : vector<16x64xf32>
    %283 = arith.mulf %282, %282 : vector<16x64xf32>
    %cst_101 = arith.constant dense<0.000000e+00> : vector<16xf32>
    %284 = vector.multi_reduction <add>, %283, %cst_101 [1] : vector<16x64xf32> to vector<16xf32>
    %285 = vector.shape_cast %284 : vector<16xf32> to vector<16x1xf32>
    %cst_102 = arith.constant 6.400000e+01 : f32
    %286 = vector.broadcast %cst_102 : f32 to vector<16x1xf32>
    %287 = arith.divf %285, %286 : vector<16x1xf32>
    %288 = vector.broadcast %280 : vector<16x1xf32> to vector<16x64xf32>
    %289 = arith.subf %274, %288 : vector<16x64xf32>
    %cst_103 = arith.constant 9.99999974E-6 : f32
    %290 = vector.broadcast %cst_103 : f32 to vector<16x1xf32>
    %291 = arith.addf %287, %290 : vector<16x1xf32>
    %292 = math.rsqrt %291 : vector<16x1xf32>
    %293 = vector.broadcast %292 : vector<16x1xf32> to vector<16x64xf32>
    %294 = arith.mulf %289, %293 : vector<16x64xf32>
    %295 = vector.broadcast %275 : vector<1x64xf32> to vector<16x64xf32>
    %296 = arith.mulf %294, %295 : vector<16x64xf32>
    %297 = vector.broadcast %276 : vector<1x64xf32> to vector<16x64xf32>
    %298 = arith.addf %296, %297 : vector<16x64xf32>
    %299 = vector.shape_cast %298 : vector<16x64xf32> to vector<2x8x64xf32>
    %c0_104 = arith.constant 0 : index
    %c0_105 = arith.constant 0 : index
    %c0_106 = arith.constant 0 : index
    %300 = vector.load %arg20[%c0_104, %c0_105, %c0_106] : memref<2x8x64xf32, #tpu.memory_space<vmem>>, vector<2x8x64xf32>
    tpu.vector_store %arg20[%c0_104, %c0_105, %c0_106], %299 {strides = array<i32>} : memref<2x8x64xf32, #tpu.memory_space<vmem>>, vector<2x8x64xf32>,
    return
  }
}

</mosaic_0001>

<bundles_post_ra>
// kernel: core_layer_forward.1
= control target key start
LH: loop header
LB: loop body
LE: loop exit
PB: predicated region body
PF: predicated region fallthrough
CT: control target
= control target key end

     0   :  { %s6473_s0 = inlined_call_operand.hbm [shape: f32[2,8,64], index: 0, kind: input, shape index: {}]   ;;  %s6474_s1 = inlined_call_operand.hbm [shape: f32[2,8,64], index: 1, kind: input, shape index: {}]   ;;  %s6475_s2 = inlined_call_operand.vmem [shape: f32[64,192], index: 2, kind: input, shape index: {}]   ;;  %s6476_s3 = inlined_call_operand.vmem [shape: f32[1,192], index: 3, kind: input, shape index: {}]   ;;  %s6477_s4 = inlined_call_operand.vmem [shape: f32[64,64], index: 4, kind: input, shape index: {}]   ;;  %s6478_s5 = inlined_call_operand.hbm [shape: f32[1,64], index: 5, kind: input, shape index: {}]   ;;  %s6479_s6 = inlined_call_operand.hbm [shape: f32[1,64], index: 6, kind: input, shape index: {}]   ;;  %s6480_s7 = inlined_call_operand.hbm [shape: f32[1,64], index: 7, kind: input, shape index: {}]   ;;  %s6481_s8 = inlined_call_operand.vmem [shape: f32[64,192], index: 8, kind: input, shape index: {}]   ;;  %s6482_s9 = inlined_call_operand.vmem [shape: f32[1,192], index: 9, kind: input, shape index: {}]   ;;  %s6483_s10 = inlined_call_operand.hbm [shape: f32[64,64], index: 10, kind: input, shape index: {}]   ;;  %s6484_s11 = inlined_call_operand.hbm [shape: f32[1,64], index: 11, kind: input, shape index: {}]   ;;  %s6485_s12 = inlined_call_operand.hbm [shape: f32[1,64], index: 12, kind: input, shape index: {}]   ;;  %s6486_s13 = inlined_call_operand.hbm [shape: f32[1,64], index: 13, kind: input, shape index: {}]   ;;  %s6487_s14 = inlined_call_operand.vmem [shape: f32[64,256], index: 14, kind: input, shape index: {}]   ;;  %s6488_s15 = inlined_call_operand.hbm [shape: f32[1,256], index: 15, kind: input, shape index: {}]   ;;  %s6489_s16 = inlined_call_operand.vmem [shape: f32[256,64], index: 16, kind: input, shape index: {}]   ;;  %s6490_s17 = inlined_call_operand.hbm [shape: f32[1,64], index: 17, kind: input, shape index: {}]   ;;  %s6491_s18 = inlined_call_operand.hbm [shape: f32[1,64], index: 18, kind: input, shape index: {}]   ;;  %s6492_s19 = inlined_call_operand.hbm [shape: f32[1,64], index: 19, kind: input, shape index: {}]   ;;  %s6493_s20 = inlined_call_operand.hbm [shape: f32[2,8,64], index: 20, kind: output, shape index: {}]  }
   0x1   :  { %6500 = sst [smem:[#allocation32_spill]] %s6473_s0 }
   0x2   :  { %6501 = sst [smem:[#allocation33_spill]] %s6474_s1 }
   0x3   :  { %6502 = sst [smem:[#allocation34_spill]] %s6475_s2 }
   0x4   :  { %6503 = sst [smem:[#allocation35_spill]] %s6476_s3 }
   0x5   :  { %6504 = sst [smem:[#allocation36_spill]] %s6477_s4 }
   0x6   :  { %25 = vsyncpa [#allocation3], 0 }
   0x7   :  { %26 = vsyncpa [#allocation6], 0 }
   0x8   :  { %27 = vsyncpa [#allocation9], 0 }
   0x9   :  { %28 = vsyncpa [#allocation12], 0 }
   0xa   :  { %29 = vsyncpa [#allocation15], 0 }
   0xb   :  { %30 = vsyncpa [#allocation18], 0 }
   0xc   :  { %31 = vsyncpa [#allocation21], 0 }
   0xd   :  { %32 = vsyncpa [#allocation4], 0  ;;  %s5440_s1 = smov [#allocation5]   ;;  %s5441_s23 = smov [#allocation8]  }
   0xe   :  { %s50_s22 = sshll.u32 %s5440_s1, 4  ;;  %s79_s24 = sshll.u32 %s5441_s23, 4  ;;  %s51_s22 = int_to_ptr.vmem [resolvable:$true] %s50_s22  ;;  %s5570_s24 = int_to_ptr.vmem [resolvable:$true] %s79_s24 }
   0xf   :  { %s6505_s3 = sld [smem:[#allocation33_spill]] }
  0x15   :  { %s5116_s26 = scalar_lea.hbm %s6505_s3, 256 }
  0x16   :  { %p5117_p0 = scmp.ne.s32.totalorder %s6505_s3, %s5116_s26  ;;  %p5120_p1 = scmp.lt.u32.totalorder %s5116_s26, %s6505_s3 }
  0x18   :  { %p5122_p2 = pnand %p5120_p1, %p5117_p0 }
  0x1a   :  { %5125 = shalt.err (!%p5122_p2)
}
  0x1b   :  { %s5126_s30 = scalar_lea.vmem %s51_s22, 256  ;;  %p5131_p4 = scmp.lt.s32.totalorder %s51_s22, %s51_s22 }
  0x1c   :  { %p5127_p3 = scmp.ne.s32.totalorder %s51_s22, %s5126_s30  ;;  %p5132_p5 = scmp.lt.s32.totalorder %s5126_s30, %s5126_s30 }
  0x1e   :  { %p5133_p6 = por %p5132_p5, %p5131_p4 }
  0x20   :  { %p5134_p7 = pnand %p5133_p6, %p5127_p3 }
  0x22   :  { %5137 = shalt.err (!%p5134_p7)
}
  0x23   :  { %s6498_s0 = smov 128   ;;  %s5443_s21 = smov 8  }
  0x24   :  { %56 = dma.hbm_to_vmem [thread:$0]  %s6505_s3, 256, %s51_s22, [#allocation6], %s6498_s0, %s6498_s0, %s5443_s21  }
  0x25   :  { %s5138_s26 = scalar_lea.hbm %s6479_s6, 16 }
  0x26   :  { %p5139_p8 = scmp.ne.s32.totalorder %s6479_s6, %s5138_s26  ;;  %p5142_p9 = scmp.lt.u32.totalorder %s5138_s26, %s6479_s6 }
  0x28   :  { %p5144_p10 = pnand %p5142_p9, %p5139_p8 }
  0x2a   :  { %5147 = shalt.err (!%p5144_p10)
}
  0x2b   :  { %s5148_s30 = scalar_lea.vmem %s5570_s24, 16  ;;  %s5152_s22 = scalar_lea.vmem %s5570_s24, 32 }
  0x2c   :  { %p5149_p11 = scmp.ne.s32.totalorder %s5570_s24, %s5148_s30  ;;  %p5153_p12 = scmp.lt.s32.totalorder %s5570_s24, %s5570_s24 }
  0x2d   :  { %p5154_p13 = scmp.lt.s32.totalorder %s5152_s22, %s5148_s30 }
  0x2f   :  { %p5155_p0 = por %p5154_p13, %p5153_p12 }
  0x31   :  { %p5156_p1 = pnand %p5155_p0, %p5149_p11 }
  0x33   :  { %5159 = shalt.err (!%p5156_p1)
}
  0x34   :  { %82 = dma.hbm_to_vmem [thread:$0]  %s6479_s6, 16, %s5570_s24, [#allocation9]  }
  0x35   :  { %s5444_s23 = smov [#allocation11]   ;;  %s5445_s25 = smov [#allocation14]  }
  0x36   :  { %s102_s2 = sshll.u32 %s5444_s23, 4  ;;  %s125_s26 = sshll.u32 %s5445_s25, 4  ;;  %s103_s2 = int_to_ptr.vmem [resolvable:$true] %s102_s2  ;;  %s126_s26 = int_to_ptr.vmem [resolvable:$true] %s125_s26 }
  0x37   :  { %s5160_s4 = scalar_lea.hbm %s6483_s10, 1024 }
  0x38   :  { %p5161_p2 = scmp.ne.s32.totalorder %s6483_s10, %s5160_s4  ;;  %p5164_p3 = scmp.lt.u32.totalorder %s5160_s4, %s6483_s10 }
  0x3a   :  { %p5166_p4 = pnand %p5164_p3, %p5161_p2 }
  0x3c   :  { %5169 = shalt.err (!%p5166_p4)
}
  0x3d   :  { %s5170_s6 = scalar_lea.vmem %s103_s2, 1024  ;;  %p5175_p6 = scmp.lt.s32.totalorder %s103_s2, %s103_s2 }
  0x3e   :  { %p5171_p5 = scmp.ne.s32.totalorder %s103_s2, %s5170_s6  ;;  %p5176_p7 = scmp.lt.s32.totalorder %s5170_s6, %s5170_s6 }
  0x40   :  { %p5177_p8 = por %p5176_p7, %p5175_p6 }
  0x42   :  { %p5178_p9 = pnand %p5177_p8, %p5171_p5 }
  0x44   :  { %5181 = shalt.err (!%p5178_p9)
}
  0x45   :  { %s6506_s24 = smov 128   ;;  %s5182_s0 = scalar_lea.hbm %s6485_s12, 16 }
  0x46   :  { %108 = dma.hbm_to_vmem [thread:$0]  %s6483_s10, 1024, %s103_s2, [#allocation12], %s6506_s24, %s6506_s24, %s5443_s21  }
  0x47   :  { %p5183_p10 = scmp.ne.s32.totalorder %s6485_s12, %s5182_s0  ;;  %p5186_p11 = scmp.lt.u32.totalorder %s5182_s0, %s6485_s12 }
  0x49   :  { %p5188_p12 = pnand %p5186_p11, %p5183_p10 }
  0x4b   :  { %5191 = shalt.err (!%p5188_p12)
}
  0x4c   :  { %s5192_s30 = scalar_lea.vmem %s126_s26, 16  ;;  %s5196_s22 = scalar_lea.vmem %s126_s26, 32 }
  0x4d   :  { %p5193_p13 = scmp.ne.s32.totalorder %s126_s26, %s5192_s30  ;;  %p5197_p0 = scmp.lt.s32.totalorder %s126_s26, %s126_s26 }
  0x4e   :  { %p5198_p1 = scmp.lt.s32.totalorder %s5196_s22, %s5192_s30 }
  0x50   :  { %p5199_p2 = por %p5198_p1, %p5197_p0 }
  0x52   :  { %p5200_p3 = pnand %p5199_p2, %p5193_p13 }
  0x54   :  { %5203 = shalt.err (!%p5200_p3)
}
  0x55   :  { %128 = dma.hbm_to_vmem [thread:$0]  %s6485_s12, 16, %s126_s26, [#allocation15]  }
  0x56   :  { %s5446_s6 = smov [#allocation17]   ;;  %s5447_s1 = smov [#allocation20]  }
  0x57   :  { %s147_s3 = sshll.u32 %s5446_s6, 4  ;;  %s169_s23 = sshll.u32 %s5447_s1, 4  ;;  %s148_s3 = int_to_ptr.vmem [resolvable:$true] %s147_s3  ;;  %s170_s23 = int_to_ptr.vmem [resolvable:$true] %s169_s23 }
  0x58   :  { %s5204_s27 = scalar_lea.hbm %s6488_s15, 32 }
  0x59   :  { %p5205_p4 = scmp.ne.s32.totalorder %s6488_s15, %s5204_s27  ;;  %p5208_p5 = scmp.lt.u32.totalorder %s5204_s27, %s6488_s15 }
  0x5b   :  { %p5210_p6 = pnand %p5208_p5, %p5205_p4 }
  0x5d   :  { %5213 = shalt.err (!%p5210_p6)
}
  0x5e   :  { %s5214_s12 = scalar_lea.vmem %s148_s3, 32  ;;  %p5219_p8 = scmp.lt.s32.totalorder %s148_s3, %s148_s3 }
  0x5f   :  { %p5215_p7 = scmp.ne.s32.totalorder %s148_s3, %s5214_s12  ;;  %p5220_p9 = scmp.lt.s32.totalorder %s5214_s12, %s5214_s12 }
  0x61   :  { %p5221_p10 = por %p5220_p9, %p5219_p8 }
  0x63   :  { %p5222_p11 = pnand %p5221_p10, %p5215_p7 }
  0x65   :  { %5225 = shalt.err (!%p5222_p11)
}
  0x66   :  { %150 = dma.hbm_to_vmem [thread:$0]  %s6488_s15, 32, %s148_s3, [#allocation18]  }
  0x67   :  { %s5226_s6 = scalar_lea.hbm %s6491_s18, 16 }
  0x68   :  { %p5227_p12 = scmp.ne.s32.totalorder %s6491_s18, %s5226_s6  ;;  %p5230_p13 = scmp.lt.u32.totalorder %s5226_s6, %s6491_s18 }
  0x6a   :  { %p5232_p0 = pnand %p5230_p13, %p5227_p12 }
  0x6c   :  { %5235 = shalt.err (!%p5232_p0)
}
  0x6d   :  { %s5236_s28 = scalar_lea.vmem %s170_s23, 16  ;;  %s5240_s4 = scalar_lea.vmem %s170_s23, 32 }
  0x6e   :  { %p5237_p1 = scmp.ne.s32.totalorder %s170_s23, %s5236_s28  ;;  %p5241_p2 = scmp.lt.s32.totalorder %s170_s23, %s170_s23 }
  0x6f   :  { %p5242_p3 = scmp.lt.s32.totalorder %s5240_s4, %s5236_s28 }
  0x71   :  { %p5243_p4 = por %p5242_p3, %p5241_p2 }
  0x73   :  { %p5244_p5 = pnand %p5243_p4, %p5237_p1 }
  0x75   :  { %5247 = shalt.err (!%p5244_p5)
}
  0x76   :  { %172 = dma.hbm_to_vmem [thread:$0]  %s6491_s18, 16, %s170_s23, [#allocation21]  }
  0x77   :  { %s5448_s29 = smov [#allocation2]   ;;  %s5449_s12 = smov [#allocation7]  }
  0x78   :  { %s38_s30 = sshll.u32 %s5448_s29, 4  ;;  %s69_s26 = sshll.u32 %s5449_s12, 4  ;;  %s39_s30 = int_to_ptr.vmem [resolvable:$true] %s38_s30  ;;  %s70_s26 = int_to_ptr.vmem [resolvable:$true] %s69_s26 }
  0x79   :  { %s6507_s2 = sld [smem:[#allocation32_spill]] }
  0x7f   :  { %s5248_s6 = scalar_lea.hbm %s6507_s2, 256 }
  0x80   :  { %p5249_p6 = scmp.ne.s32.totalorder %s6507_s2, %s5248_s6  ;;  %p5252_p7 = scmp.lt.u32.totalorder %s5248_s6, %s6507_s2 }
  0x82   :  { %p5254_p8 = pnand %p5252_p7, %p5249_p6 }
  0x84   :  { %5257 = shalt.err (!%p5254_p8)
}
  0x85   :  { %s5258_s18 = scalar_lea.vmem %s39_s30, 256  ;;  %p5263_p10 = scmp.lt.s32.totalorder %s39_s30, %s39_s30 }
  0x86   :  { %p5259_p9 = scmp.ne.s32.totalorder %s39_s30, %s5258_s18  ;;  %p5264_p11 = scmp.lt.s32.totalorder %s5258_s18, %s5258_s18 }
  0x88   :  { %p5265_p12 = por %p5264_p11, %p5263_p10 }
  0x8a   :  { %p5266_p13 = pnand %p5265_p12, %p5259_p9 }
  0x8c   :  { %5269 = shalt.err (!%p5266_p13)
}
  0x8d   :  { %44 = dma.hbm_to_vmem [thread:$0]  %s6507_s2, 256, %s39_s30, [#allocation3], %s6506_s24, %s6506_s24, %s5443_s21  }
  0x8e   :  { %s5270_s3 = scalar_lea.hbm %s6478_s5, 16 }
  0x8f   :  { %p5271_p0 = scmp.ne.s32.totalorder %s6478_s5, %s5270_s3  ;;  %p5274_p1 = scmp.lt.u32.totalorder %s5270_s3, %s6478_s5 }
  0x91   :  { %p5276_p2 = pnand %p5274_p1, %p5271_p0 }
  0x93   :  { %5279 = shalt.err (!%p5276_p2)
}
  0x94   :  { %s5280_s6 = scalar_lea.vmem %s70_s26, 16  ;;  %s5284_s1 = scalar_lea.vmem %s70_s26, 32 }
  0x95   :  { %p5281_p3 = scmp.ne.s32.totalorder %s70_s26, %s5280_s6  ;;  %p5285_p4 = scmp.lt.s32.totalorder %s70_s26, %s70_s26 }
  0x96   :  { %p5286_p5 = scmp.lt.s32.totalorder %s5284_s1, %s5280_s6 }
  0x98   :  { %p5287_p6 = por %p5286_p5, %p5285_p4 }
  0x9a   :  { %p5288_p7 = pnand %p5287_p6, %p5281_p3 }
  0x9c   :  { %5291 = shalt.err (!%p5288_p7)
}
  0x9d   :  { %72 = dma.hbm_to_vmem [thread:$0]  %s6478_s5, 16, %s70_s26, [#allocation6]  }
  0x9e   :  { %s5450_s25 = smov [#allocation10]   ;;  %s5451_s27 = smov [#allocation13]  }
  0x9f   :  { %s89_s0 = sshll.u32 %s5450_s25, 4  ;;  %s115_s18 = sshll.u32 %s5451_s27, 4  ;;  %s90_s0 = int_to_ptr.vmem [resolvable:$true] %s89_s0  ;;  %s116_s18 = int_to_ptr.vmem [resolvable:$true] %s115_s18 }
  0xa0   :  { %s5292_s4 = scalar_lea.hbm %s6480_s7, 16 }
  0xa1   :  { %p5293_p8 = scmp.ne.s32.totalorder %s6480_s7, %s5292_s4  ;;  %p5296_p9 = scmp.lt.u32.totalorder %s5292_s4, %s6480_s7 }
  0xa3   :  { %p5298_p10 = pnand %p5296_p9, %p5293_p8 }
  0xa5   :  { %5301 = shalt.err (!%p5298_p10)
}
  0xa6   :  { %s5302_s5 = scalar_lea.vmem %s90_s0, 16  ;;  %s5306_s26 = scalar_lea.vmem %s90_s0, 32 }
  0xa7   :  { %p5303_p11 = scmp.ne.s32.totalorder %s90_s0, %s5302_s5  ;;  %p5307_p12 = scmp.lt.s32.totalorder %s90_s0, %s90_s0 }
  0xa8   :  { %p5308_p13 = scmp.lt.s32.totalorder %s5306_s26, %s5302_s5 }
  0xaa   :  { %p5309_p0 = por %p5308_p13, %p5307_p12 }
  0xac   :  { %p5310_p1 = pnand %p5309_p0, %p5303_p11 }
  0xae   :  { %5313 = shalt.err (!%p5310_p1)
}
  0xaf   :  { %92 = dma.hbm_to_vmem [thread:$0]  %s6480_s7, 16, %s90_s0, [#allocation9]  }
  0xb0   :  { %s5314_s30 = scalar_lea.hbm %s6484_s11, 16 }
  0xb1   :  { %p5315_p2 = scmp.ne.s32.totalorder %s6484_s11, %s5314_s30  ;;  %p5318_p3 = scmp.lt.u32.totalorder %s5314_s30, %s6484_s11 }
  0xb3   :  { %p5320_p4 = pnand %p5318_p3, %p5315_p2 }
  0xb5   :  { %5323 = shalt.err (!%p5320_p4)
}
  0xb6   :  { %s5324_s28 = scalar_lea.vmem %s116_s18, 16  ;;  %s5328_s4 = scalar_lea.vmem %s116_s18, 32 }
  0xb7   :  { %p5325_p5 = scmp.ne.s32.totalorder %s116_s18, %s5324_s28  ;;  %p5329_p6 = scmp.lt.s32.totalorder %s116_s18, %s116_s18 }
  0xb8   :  { %p5330_p7 = scmp.lt.s32.totalorder %s5328_s4, %s5324_s28 }
  0xba   :  { %p5331_p8 = por %p5330_p7, %p5329_p6 }
  0xbc   :  { %p5332_p9 = pnand %p5331_p8, %p5325_p5 }
  0xbe   :  { %5335 = shalt.err (!%p5332_p9)
}
  0xbf   :  { %118 = dma.hbm_to_vmem [thread:$0]  %s6484_s11, 16, %s116_s18, [#allocation12]  }
  0xc0   :  { %s5452_s15 = smov [#allocation16]   ;;  %s5453_s29 = smov [#allocation19]  }
  0xc1   :  { %s135_s3 = sshll.u32 %s5452_s15, 4  ;;  %s159_s12 = sshll.u32 %s5453_s29, 4  ;;  %s136_s3 = int_to_ptr.vmem [resolvable:$true] %s135_s3  ;;  %s160_s12 = int_to_ptr.vmem [resolvable:$true] %s159_s12 }
  0xc2   :  { %s5336_s22 = scalar_lea.hbm %s6486_s13, 16 }
  0xc3   :  { %p5337_p10 = scmp.ne.s32.totalorder %s6486_s13, %s5336_s22  ;;  %p5340_p11 = scmp.lt.u32.totalorder %s5336_s22, %s6486_s13 }
  0xc5   :  { %p5342_p12 = pnand %p5340_p11, %p5337_p10 }
  0xc7   :  { %5345 = shalt.err (!%p5342_p12)
}
  0xc8   :  { %s5346_s11 = scalar_lea.vmem %s136_s3, 16  ;;  %s5350_s18 = scalar_lea.vmem %s136_s3, 32 }
  0xc9   :  { %p5347_p13 = scmp.ne.s32.totalorder %s136_s3, %s5346_s11  ;;  %p5351_p0 = scmp.lt.s32.totalorder %s136_s3, %s136_s3 }
  0xca   :  { %p5352_p1 = scmp.lt.s32.totalorder %s5350_s18, %s5346_s11 }
  0xcc   :  { %p5353_p2 = por %p5352_p1, %p5351_p0 }
  0xce   :  { %p5354_p3 = pnand %p5353_p2, %p5347_p13 }
  0xd0   :  { %5357 = shalt.err (!%p5354_p3)
}
  0xd1   :  { %138 = dma.hbm_to_vmem [thread:$0]  %s6486_s13, 16, %s136_s3, [#allocation15]  }
  0xd2   :  { %s5358_s28 = scalar_lea.hbm %s6490_s17, 16 }
  0xd3   :  { %p5359_p4 = scmp.ne.s32.totalorder %s6490_s17, %s5358_s28  ;;  %p5362_p5 = scmp.lt.u32.totalorder %s5358_s28, %s6490_s17 }
  0xd5   :  { %p5364_p6 = pnand %p5362_p5, %p5359_p4 }
  0xd7   :  { %5367 = shalt.err (!%p5364_p6)
}
  0xd8   :  { %s5368_s29 = scalar_lea.vmem %s160_s12, 16  ;;  %s5372_s5 = scalar_lea.vmem %s160_s12, 32 }
  0xd9   :  { %p5369_p7 = scmp.ne.s32.totalorder %s160_s12, %s5368_s29  ;;  %p5373_p8 = scmp.lt.s32.totalorder %s160_s12, %s160_s12 }
  0xda   :  { %p5374_p9 = scmp.lt.s32.totalorder %s5372_s5, %s5368_s29 }
  0xdc   :  { %p5375_p10 = por %p5374_p9, %p5373_p8 }
  0xde   :  { %p5376_p11 = pnand %p5375_p10, %p5369_p7 }
  0xe0   :  { %5379 = shalt.err (!%p5376_p11)
}
  0xe1   :  { %162 = dma.hbm_to_vmem [thread:$0]  %s6490_s17, 16, %s160_s12, [#allocation18]  }
  0xe2   :  { %s5454_s26 = smov [#allocation22]   ;;  %s5380_s1 = scalar_lea.hbm %s6492_s19, 16 }
  0xe3   :  { %s179_s22 = sshll.u32 %s5454_s26, 4  ;;  %p5381_p12 = scmp.ne.s32.totalorder %s6492_s19, %s5380_s1  ;;  %s180_s22 = int_to_ptr.vmem [resolvable:$true] %s179_s22 }
  0xe4   :  { %p5384_p13 = scmp.lt.u32.totalorder %s5380_s1, %s6492_s19 }
  0xe6   :  { %p5386_p0 = pnand %p5384_p13, %p5381_p12 }
  0xe8   :  { %5389 = shalt.err (!%p5386_p0)
}
  0xe9   :  { %s5390_s25 = scalar_lea.vmem %s180_s22, 16  ;;  %s5394_s17 = scalar_lea.vmem %s180_s22, 32 }
  0xea   :  { %p5391_p1 = scmp.ne.s32.totalorder %s180_s22, %s5390_s25  ;;  %p5395_p2 = scmp.lt.s32.totalorder %s180_s22, %s180_s22 }
  0xeb   :  { %p5396_p3 = scmp.lt.s32.totalorder %s5394_s17, %s5390_s25 }
  0xed   :  { %p5397_p4 = por %p5396_p3, %p5395_p2 }
  0xef   :  { %p5398_p5 = pnand %p5397_p4, %p5391_p1 }
  0xf1   :  { %5401 = shalt.err (!%p5398_p5)
}
  0xf2   :  { %182 = dma.hbm_to_vmem [thread:$0]  %s6492_s19, 16, %s180_s22, [#allocation21]  }
  0xf3   :  { %5424 = dma.done.wait [#allocation3], 256  }
  0xf4   :  { %5425 = vsyncadd [#allocation3], 4294967040 }
  0xf5   :  { %5426 = dma.done.wait [#allocation6], 272  }
  0xf6   :  { %5427 = vsyncadd [#allocation6], 4294967024 }
  0xf7   :  { %5428 = dma.done.wait [#allocation9], 32  }
  0xf8   :  { %5429 = vsyncadd [#allocation9], 4294967264 }
  0xf9   :  { %5430 = dma.done.wait [#allocation12], 1040  }
  0xfa   :  { %5431 = vsyncadd [#allocation12], 4294966256 }
  0xfb   :  { %5432 = dma.done.wait [#allocation15], 32  }
  0xfc   :  { %5433 = vsyncadd [#allocation15], 4294967264 }
  0xfd   :  { %5434 = dma.done.wait [#allocation18], 48  }
  0xfe   :  { %5435 = vsyncadd [#allocation18], 4294967248 }
  0xff   :  { %5436 = dma.done.wait [#allocation21], 32  }
 0x100   :  { %5437 = vsyncadd [#allocation21], 4294967264  ;;  %v5455_v0 = vmov 0.0   ;;  %s6508_s28 = sld [smem:[#allocation34_spill]]  ;;  %v5793_v25 = vld [vmem:[#allocation2] sm:$0xff]  ;;  %vm269_vm0 = vcmask 523264   ;;  %v226_v27 = vlaneseq }
 0x101   :  { %340 = vmatprep.mubr.f32.mxu0 %v5455_v0  ;;  %4583 = vmatprep.subr.mxu1 %v5455_v0  ;;  %v5799_v26 = vld [vmem:[#allocation2 + $0x8] sm:$0xff]  ;;  %vm5456_vm1 = vmmov 0   ;;  %s6509_s26 = sld [smem:[#allocation35_spill]]  ;;  %s5457_s22 = smov 64   ;;  %vm356_vm2 = vcmask 130048   ;;  %vm508_vm4 = vcmask 64512  }
 0x102   :  { %v227_v28 = vshrl.u32 %v226_v27, 7  ;;  %4585 = vmatprep.mubr.msk.f32.mxu1 %vm5456_vm1, %v5455_v0  ;;  %s5458_s10 = smov 48   ;;  %s5459_s6 = smov 112   ;;  %v229_v46 = vand.u32 127, %v226_v27 }
 0x103   :  { %s5460_s1 = smov 96   ;;  %s5461_s30 = smov 32  }
 0x104   :  { %v5807_v29 = vsub.s32 0, %v227_v28  ;;  %v5812_v31 = vsub.s32 1, %v227_v28  ;;  %vm230_vm3 = vcmp.gt.s32.totalorder %v229_v46, %v227_v28  ;;  %s5462_s11 = smov 16   ;;  %s5463_s18 = smov 80  }
 0x105   :  { %v5852_v47 = vsel %vm230_vm3, -1e+30, %v5455_v0  ;;  %s6510_s17 = sld [smem:[#allocation36_spill]] }
 0x106   :  { %v233_v1 = vld [vmem:[%s6508_s28 + $0x8] sm:$0xff]  ;;  %v235_v2 = vld [vmem:[%s6508_s28 + $0x18] sm:$0xff]  ;;  %v232_v3 = vld [vmem:[%s6508_s28] sm:$0xff] }
 0x107   :  { %v4827_v4 = vpack.c.bf16 %v235_v2, %v233_v1  ;;  %v234_v5 = vld [vmem:[%s6508_s28 + $0x10] sm:$0xff]  ;;  %v237_v6 = vld [vmem:[%s6508_s28 + $0x28] sm:$0xff]  ;;  %v239_v7 = vld [vmem:[%s6508_s28 + $0x38] sm:$0xff] }
 0x108   :  { %v4829_v8 = vpack.c.bf16 %v234_v5, %v232_v3  ;;  %v4831_v9 = vpack.c.bf16 %v239_v7, %v237_v6  ;;  %v236_v10 = vld [vmem:[%s6508_s28 + $0x20] sm:$0xff]  ;;  %v238_v11 = vld [vmem:[%s6508_s28 + $0x30] sm:$0xff]  ;;  %v241_v12 = vld [vmem:[%s6508_s28 + $0x48] sm:$0xff] }
 0x109   :  { %4828 = vmatprep.subr.bf16.mxu0 %v4827_v4  ;;  %v243_v13 = vld [vmem:[%s6508_s28 + $0x58] sm:$0xff]  ;;  %v4833_v14 = vpack.c.bf16 %v238_v11, %v236_v10  ;;  %v240_v16 = vld [vmem:[%s6508_s28 + $0x40] sm:$0xff]  ;;  %v242_v17 = vld [vmem:[%s6508_s28 + $0x50] sm:$0xff] }
 0x10a   :  { %4830 = vmatpush1.bf16.msra.mxu0 %v4829_v8  ;;  %v4835_v15 = vpack.c.bf16 %v243_v13, %v241_v12  ;;  %v245_v18 = vld [vmem:[%s6508_s28 + $0x68] sm:$0xff]  ;;  %v247_v19 = vld [vmem:[%s6508_s28 + $0x78] sm:$0xff]  ;;  %v4837_v20 = vpack.c.bf16 %v242_v17, %v240_v16  ;;  %v244_v22 = vld [vmem:[%s6508_s28 + $0x60] sm:$0xff] }
 0x10b   :  { %4832 = vmatprep.subr.bf16.mxu0 %v4831_v9  ;;  %v4839_v21 = vpack.c.bf16 %v247_v19, %v245_v18  ;;  %v246_v23 = vld [vmem:[%s6508_s28 + $0x70] sm:$0xff]  ;;  %v248_v30 = vld [vmem:[%s6509_s26] sm:$0x3] }
 0x10c   :  { %v4841_v24 = vpack.c.bf16 %v246_v23, %v244_v22  ;;  %v262_v32 = vrot.slane %v248_v30, %v5807_v29  ;;  %v266_v33 = vrot.slane %v248_v30, %v5812_v31 }
 0x10e   :  { %4834 = vmatpush1.bf16.msra.mxu0 %v4833_v14 }
 0x10f   :  { %4836 = vmatprep.subr.bf16.mxu0 %v4835_v15 }
 0x112   :  { %4838 = vmatpush1.bf16.msra.mxu0 %v4837_v20 }
 0x113   :  { %4840 = vmatprep.subr.bf16.mxu0 %v4839_v21 }
 0x116   :  { %4842 = vmatpush1.bf16.msra.mxu0 %v4841_v24 }
 0x117   :  { %4573 = vmatprep.subr.mxu0 %v5455_v0 }
 0x119   :  { %4334 = vmatmul.mubr.msk.f32.vlgmr.msra.gmra.mrb[0].mxu0 %vm269_vm0, %v5793_v25 }
 0x11a   :  { %346 = vmatprep.mubr.f32.mxu0 %v5455_v0 }
 0x11d   :  { %4335 = vmatmul.mubr.msk.f32.gmra.mrb[2].mxu0 %vm269_vm0, %v5799_v26 }
 0x11e   :  { %4575 = vmatprep.mubr.msk.f32.mxu0 %vm5456_vm1, %v5455_v0 }
 0x1ec   :  { %v342_v34 = vpop.f32.mrb[0].mxu0 }
 0x1ed   :  { %v5816_v35 = vadd.f32 %v342_v34, %v262_v32  ;;  %v344_v36 = vpop.f32.mrb[1].mxu0 }
 0x1ee   :  { %v5818_v37 = vadd.f32 %v344_v36, %v266_v33 }
 0x1ef   :  { %354 = vrot.lane.b32.xlu0 %v5816_v35, %s5457_s22 }
 0x1f0   :  { %v348_v38 = vpop.f32.mrb[2].mxu0  ;;  %4584 = vmatpush3.msra.mxu1 %v5818_v37 }
 0x1f1   :  { %v5823_v39 = vadd.f32 %v348_v38, %v262_v32  ;;  %v350_v40 = vpop.f32.mrb[3].mxu0  ;;  %4588 = vmatprep.subr.mxu1 %v5455_v0 }
 0x1f2   :  { %v5826_v41 = vadd.f32 %v350_v40, %v266_v33 }
 0x1f3   :  { %432 = vrot.lane.b32.xlu0 %v5823_v39, %s5457_s22  ;;  %757 = vrot.lane.b32.xlu1 %v5823_v39, %s5458_s10 }
 0x1f7   :  { %755 = vrot.lane.b32.xlu1 %v5823_v39, %s5459_s6 }
 0x261   :  { %v355_v42 = vpop.permute.xlu0 %354 }
 0x262   :  { %4574 = vmatpush3.xpose.msk.msra.mxu0 %vm356_vm2, %v355_v42 }
 0x263   :  { %4578 = vmatprep.subr.mxu0 %v5455_v0 }
 0x265   :  { %4576 = vmatmul.mubr.msk.f32.vlgmr.msra.gmra.mrb[4].mxu0 %vm356_vm2, %v5816_v35  ;;  %v433_v43 = vpop.permute.xlu0 %432  ;;  %v758_v44 = vpop.permute.xlu1 %757 }
 0x266   :  { %4579 = vmatpush3.xpose.msk.msra.mxu0 %vm356_vm2, %v433_v43  ;;  %4580 = vmatprep.mubr.msk.f32.mxu0 %vm5456_vm1, %v5455_v0 }
 0x267   :  { %4598 = vmatprep.subr.mxu0 %v5455_v0 }
 0x269   :  { %4581 = vmatmul.mubr.msk.f32.vlgmr.msra.gmra.mrb[6].mxu0 %vm356_vm2, %v5823_v39  ;;  %v756_v45 = vpop.permute.xlu1 %755 }
 0x26a   :  { %4599 = vmatpush3.xpose.msk.msra.mxu0 %vm356_vm2, %v758_v44  ;;  %4600 = vmatprep.mubr.msk.f32.mxu0 %vm5456_vm1, %v5455_v0 }
 0x26b   :  { %4608 = vmatprep.subr.mxu0 %v5455_v0 }
 0x26d   :  { %4601 = vmatmul.mubr.msk.f32.vlgmr.msra.gmra.mrb[8].mxu0 %vm356_vm2, %v756_v45 }
 0x26e   :  { %4610 = vmatprep.mubr.msk.f32.mxu0 %vm5456_vm1, %v5455_v0 }
 0x338   :  { %v427_v48 = vpop.f32.mrb[4].mxu0 }
 0x339   :  { %v428_v49 = vadd.f32 %v427_v48, %v5852_v47  ;;  %v4577_v50 = vpop.f32.mrb[5].mxu0 }
 0x33b   :  { %v509_v51 = vsel %vm508_vm4, %v428_v49, -inf }
 0x33c   :  { %510 = vmax.xlane.f32.xlu0 %v509_v51  ;;  %v504_v52 = vpop.f32.mrb[6].mxu0 }
 0x33d   :  { %v505_v53 = vadd.f32 %v504_v52, %v5852_v47  ;;  %v4582_v54 = vpop.f32.mrb[7].mxu0 }
 0x33f   :  { %v512_v55 = vsel %vm508_vm4, %v505_v53, -inf }
 0x340   :  { %513 = vmax.xlane.f32.xlu1 %v512_v55  ;;  %v829_v56 = vpop.f32.mrb[8].mxu0 }
 0x341   :  { %v4602_v57 = vpop.f32.mrb[9].mxu0  ;;  %v830_v58 = vadd.f32 %v829_v56, %v5852_v47 }
 0x343   :  { %v836_v59 = vsel %vm508_vm4, %v830_v58, -inf }
 0x351   :  { %679 = vrot.lane.b32.xlu1 %v5816_v35, %s5458_s10 }
 0x375   :  { %837 = vmax.xlane.f32.xlu1 %v836_v59 }
 0x386   :  { %933 = vrot.lane.b32.xlu1 %v5826_v41, %s5459_s6 }
 0x38a   :  { %1171 = vrot.lane.b32.xlu1 %v5816_v35, %s5460_s1 }
 0x38e   :  { %1251 = vrot.lane.b32.xlu1 %v5823_v39, %s5461_s30 }
 0x3c9   :  { %v511_v60 = vpop.xlane.xlu0 %510 }
 0x3ca   :  { %v515_v61 = vsub.f32 %v428_v49, %v511_v60 }
 0x3cc   :  { %v517_v62 = vmul.f32 1.442695, %v515_v61 }
 0x3cd   :  { %v514_v63 = vpop.xlane.xlu1 %513 }
 0x3ce   :  { %5032 = vpow2.f32 %v517_v62  ;;  %v516_v1 = vsub.f32 %v505_v53, %v514_v63 }
 0x3d0   :  { %v519_v2 = vmul.f32 1.442695, %v516_v1 }
 0x3d1   :  { %v680_v7 = vpop.permute.xlu1 %679 }
 0x3d2   :  { %5034 = vpow2.f32 %v519_v2 }
 0x3d8   :  { %v5033_v3 = vpop.eup %5032 }
 0x3d9   :  { %v521_v4 = vsel %vm508_vm4, %v5033_v3, 0.0 }
 0x3da   :  { %522 = vadd.xlane.f32.xlu0 %v521_v4 }
 0x3dc   :  { %v5035_v5 = vpop.eup %5034 }
 0x3dd   :  { %v524_v6 = vsel %vm508_vm4, %v5035_v5, 0.0 }
 0x3de   :  { %525 = vadd.xlane.f32.xlu0 %v524_v6 }
 0x3f4   :  { %677 = vrot.lane.b32.xlu0 %v5816_v35, %s5459_s6 }
 0x402   :  { %v838_v8 = vpop.xlane.xlu1 %837 }
 0x403   :  { %v840_v9 = vsub.f32 %v830_v58, %v838_v8 }
 0x405   :  { %v843_v10 = vmul.f32 1.442695, %v840_v9 }
 0x406   :  { %v934_v11 = vpop.permute.xlu1 %933 }
 0x407   :  { %5036 = vpow2.f32 %v843_v10  ;;  %4609 = vmatpush3.msra.mxu0 %v934_v11 }
 0x408   :  { %4627 = vmatprep.subr.mxu0 %v5455_v0 }
 0x40a   :  { %v1172_v23 = vpop.permute.xlu1 %1171 }
 0x40e   :  { %v1252_v28 = vpop.permute.xlu1 %1251 }
 0x411   :  { %v5037_v12 = vpop.eup %5036 }
 0x412   :  { %v848_v13 = vsel %vm508_vm4, %v5037_v12, 0.0 }
 0x413   :  { %849 = vadd.xlane.f32.xlu0 %v848_v13 }
 0x429   :  { %1173 = vrot.lane.b32.xlu0 %v5816_v35, %s5461_s30 }
 0x42d   :  { %1249 = vrot.lane.b32.xlu0 %v5823_v39, %s5460_s1 }
 0x467   :  { %v523_v14 = vpop.xlane.xlu0 %522 }
 0x468   :  { %5038 = vrcp.f32 %v523_v14 }
 0x46b   :  { %v526_v15 = vpop.xlane.xlu0 %525 }
 0x46c   :  { %5040 = vrcp.f32 %v526_v15 }
 0x46f   :  { %v678_v20 = vpop.permute.xlu0 %677 }
 0x472   :  { %v5039_v16 = vpop.eup %5038 }
 0x473   :  { %v529_v17 = vmul.f32 %v5039_v16, %v5033_v3 }
 0x475   :  { %4586 = vmatmul.mubr.msk.f32.vlgmr.msra.gmra.mrb[0].mxu1 %vm508_vm4, %v529_v17 }
 0x476   :  { %v5041_v18 = vpop.eup %5040  ;;  %4589 = vmatpush3.msra.mxu1 %v5826_v41  ;;  %4590 = vmatprep.mubr.msk.f32.mxu1 %vm5456_vm1, %v5455_v0 }
 0x477   :  { %v530_v19 = vmul.f32 %v5041_v18, %v5035_v5  ;;  %4593 = vmatprep.subr.mxu1 %v5455_v0 }
 0x479   :  { %4591 = vmatmul.mubr.msk.f32.vlgmr.msra.gmra.mrb[2].mxu1 %vm508_vm4, %v530_v19 }
 0x47a   :  { %4595 = vmatprep.mubr.msk.f32.mxu1 %vm5456_vm1, %v5455_v0 }
 0x47d   :  { %4594 = vmatpush3.xpose.msk.msra.mxu1 %vm356_vm2, %v680_v7  ;;  %v252_v7 = vld [vmem:[%s6510_s17 + $0x18] sm:$0xff] }
 0x47e   :  { %4603 = vmatprep.subr.mxu1 %v5455_v0 }
 0x480   :  { %4596 = vmatmul.mubr.msk.f32.vlgmr.msra.gmra.mrb[4].mxu1 %vm356_vm2, %v678_v20  ;;  %v249_v20 = vld [vmem:[%s6510_s17] sm:$0xff] }
 0x481   :  { %4605 = vmatprep.mubr.msk.f32.mxu1 %vm5456_vm1, %v5455_v0 }
 0x4a0   :  { %v850_v21 = vpop.xlane.xlu0 %849 }
 0x4a1   :  { %5042 = vrcp.f32 %v850_v21  ;;  %v250_v21 = vld [vmem:[%s6510_s17 + $0x8] sm:$0xff] }
 0x4a4   :  { %v1174_v27 = vpop.permute.xlu0 %1173 }
 0x4a8   :  { %v1250_v30 = vpop.permute.xlu0 %1249 }
 0x4ab   :  { %v5043_v22 = vpop.eup %5042 }
 0x4ac   :  { %v854_v24 = vmul.f32 %v5043_v22, %v5037_v12  ;;  %v4847_v22 = vpack.c.bf16 %v250_v21, %v249_v20  ;;  %v2053_v20 = vld [vmem:[%s6481_s8 + $0x8] sm:$0xff] }
 0x4ae   :  { %4611 = vmatmul.mubr.msk.f32.vlgmr.msra.gmra.mrb[10].mxu0 %vm508_vm4, %v854_v24 }
 0x4af   :  { %4628 = vmatpush3.xpose.msk.msra.mxu0 %vm356_vm2, %v1174_v27  ;;  %4629 = vmatprep.mubr.msk.f32.mxu0 %vm5456_vm1, %v5455_v0 }
 0x4b0   :  { %4632 = vmatprep.subr.mxu0 %v5455_v0 }
 0x4b2   :  { %4630 = vmatmul.mubr.msk.f32.vlgmr.msra.gmra.mrb[12].mxu0 %vm356_vm2, %v1172_v23 }
 0x4b3   :  { %4633 = vmatpush3.xpose.msk.msra.mxu0 %vm356_vm2, %v1252_v28  ;;  %4634 = vmatprep.mubr.msk.f32.mxu0 %vm5456_vm1, %v5455_v0 }
 0x4b4   :  { %4642 = vmatprep.subr.mxu0 %v5455_v0 }
 0x4b6   :  { %4635 = vmatmul.mubr.msk.f32.vlgmr.msra.gmra.mrb[14].mxu0 %vm356_vm2, %v1250_v30 }
 0x4b7   :  { %4644 = vmatprep.mubr.msk.f32.mxu0 %vm5456_vm1, %v5455_v0 }
 0x548   :  { %v5904_v32 = vpop.f32.mrb[0].mxu1 }
 0x549   :  { %v4587_v33 = vpop.f32.mrb[1].mxu1 }
 0x54c   :  { %v5906_v34 = vpop.f32.mrb[2].mxu1 }
 0x54d   :  { %v4592_v36 = vpop.f32.mrb[3].mxu1 }
 0x553   :  { %v751_v38 = vpop.f32.mrb[4].mxu1 }
 0x554   :  { %v752_v40 = vadd.f32 %v751_v38, %v5852_v47  ;;  %v4597_v42 = vpop.f32.mrb[5].mxu1 }
 0x556   :  { %v833_v43 = vsel %vm508_vm4, %v752_v40, -inf }
 0x557   :  { %834 = vmax.xlane.f32.xlu1 %v833_v43  ;;  %v254_v43 = vld [vmem:[%s6510_s17 + $0x28] sm:$0xff] }
 0x581   :  { %v5910_v44 = vpop.f32.mrb[10].mxu0 }
 0x582   :  { %v4612_v45 = vpop.f32.mrb[11].mxu0 }
 0x585   :  { %v1245_v46 = vpop.f32.mrb[12].mxu0 }
 0x586   :  { %v1246_v48 = vadd.f32 %v1245_v46, %v5852_v47  ;;  %v4631_v49 = vpop.f32.mrb[13].mxu0 }
 0x588   :  { %v1327_v50 = vsel %vm508_vm4, %v1246_v48, -inf }
 0x589   :  { %1328 = vmax.xlane.f32.xlu1 %v1327_v50  ;;  %v1323_v51 = vpop.f32.mrb[14].mxu0 }
 0x58a   :  { %v1324_v52 = vadd.f32 %v1323_v51, %v5852_v47  ;;  %v4636_v53 = vpop.f32.mrb[15].mxu0 }
 0x58c   :  { %v1330_v54 = vsel %vm508_vm4, %v1324_v52, -inf }
 0x58d   :  { %1331 = vmax.xlane.f32.xlu1 %v1330_v54 }
 0x5e4   :  { %v835_v55 = vpop.xlane.xlu1 %834 }
 0x5e5   :  { %v839_v56 = vsub.f32 %v752_v40, %v835_v55 }
 0x5e7   :  { %v841_v57 = vmul.f32 1.442695, %v839_v56 }
 0x5e9   :  { %5044 = vpow2.f32 %v841_v57 }
 0x5f3   :  { %v5045_v58 = vpop.eup %5044 }
 0x5f4   :  { %v845_v59 = vsel %vm508_vm4, %v5045_v58, 0.0 }
 0x5f5   :  { %846 = vadd.xlane.f32.xlu0 %v845_v59 }
 0x60b   :  { %856 = vrot.lane.b32.xlu0 %v5818_v37, %s5459_s6 }
 0x60f   :  { %1425 = vrot.lane.b32.xlu0 %v5826_v41, %s5460_s1 }
 0x613   :  { %1586 = vrot.lane.b32.xlu0 %v5816_v35, %s5462_s11 }
 0x616   :  { %v1329_v60 = vpop.xlane.xlu1 %1328 }
 0x617   :  { %1664 = vrot.lane.b32.xlu0 %v5823_v39, %s5462_s11  ;;  %v1333_v61 = vsub.f32 %v1246_v48, %v1329_v60 }
 0x619   :  { %v1335_v62 = vmul.f32 1.442695, %v1333_v61 }
 0x61a   :  { %v1332_v63 = vpop.xlane.xlu1 %1331 }
 0x61b   :  { %5046 = vpow2.f32 %v1335_v62  ;;  %1584 = vrot.lane.b32.xlu0 %v5816_v35, %s5463_s18  ;;  %v1334_v1 = vsub.f32 %v1324_v52, %v1332_v63  ;;  %v251_v35 = vld [vmem:[%s6510_s17 + $0x10] sm:$0xff] }
 0x61c   :  { %v4843_v9 = vpack.c.bf16 %v252_v7, %v251_v35 }
 0x61d   :  { %v1337_v2 = vmul.f32 1.442695, %v1334_v1 }
 0x61f   :  { %5048 = vpow2.f32 %v1337_v2 }
 0x625   :  { %v5047_v3 = vpop.eup %5046 }
 0x626   :  { %v1339_v4 = vsel %vm508_vm4, %v5047_v3, 0.0 }
 0x627   :  { %1340 = vadd.xlane.f32.xlu1 %v1339_v4 }
 0x629   :  { %v5049_v5 = vpop.eup %5048 }
 0x62a   :  { %v1342_v6 = vsel %vm508_vm4, %v5049_v5, 0.0 }
 0x62b   :  { %1343 = vadd.xlane.f32.xlu1 %v1342_v6 }
 0x63c   :  { %1349 = vrot.lane.b32.xlu1 %v5818_v37, %s5460_s1 }
 0x640   :  { %1662 = vrot.lane.b32.xlu1 %v5823_v39, %s5463_s18 }
 0x682   :  { %v847_v8 = vpop.xlane.xlu0 %846 }
 0x683   :  { %5050 = vrcp.f32 %v847_v8 }
 0x686   :  { %v857_v10 = vpop.permute.xlu0 %856 }
 0x687   :  { %4604 = vmatpush3.msra.mxu1 %v857_v10 }
 0x688   :  { %4844 = vmatprep.subr.bf16.mxu1 %v4843_v9 }
 0x68a   :  { %v1426_v11 = vpop.permute.xlu0 %1425 }
 0x68b   :  { %4643 = vmatpush3.msra.mxu0 %v1426_v11  ;;  %v4368_v11 = vld [vmem:[#allocation7] ss:$0 sm:$0xff] }
 0x68c   :  { %4654 = vmatprep.subr.mxu0 %v5455_v0 }
 0x68d   :  { %v5051_v12 = vpop.eup %5050 }
 0x68e   :  { %v853_v39 = vmul.f32 %v5051_v12, %v5045_v58  ;;  %v1587_v15 = vpop.permute.xlu0 %1586 }
 0x690   :  { %4606 = vmatmul.mubr.msk.f32.vlgmr.msra.gmra.mrb[6].mxu1 %vm508_vm4, %v853_v39 }
 0x691   :  { %4846 = vmatpush3.bf16.msra.mxu1 %v4843_v9 }
 0x692   :  { %v1665_v17 = vpop.permute.xlu0 %1664  ;;  %4848 = vmatprep.subr.bf16.mxu1 %v4847_v22 }
 0x696   :  { %v1585_v19 = vpop.permute.xlu0 %1584 }
 0x6b4   :  { %v1341_v13 = vpop.xlane.xlu1 %1340 }
 0x6b8   :  { %v1344_v14 = vpop.xlane.xlu1 %1343 }
 0x6b9   :  { %5052 = vrcp.f32 %v1344_v14 }
 0x6ba   :  { %5054 = vrcp.f32 %v1341_v13 }
 0x6bc   :  { %v1350_v28 = vpop.permute.xlu1 %1349 }
 0x6c0   :  { %v1663_v53 = vpop.permute.xlu1 %1662 }
 0x6c3   :  { %v5053_v16 = vpop.eup %5052 }
 0x6c4   :  { %v1348_v18 = vmul.f32 %v5053_v16, %v5049_v5  ;;  %v5055_v27 = vpop.eup %5054 }
 0x6c5   :  { %v1347_v30 = vmul.f32 %v5055_v27, %v5047_v3  ;;  %v256_v3 = vld [vmem:[%s6510_s17 + $0x38] sm:$0xff] }
 0x6c6   :  { %4645 = vmatmul.mubr.msk.f32.vlgmr.msra.gmra.mrb[16].mxu0 %vm508_vm4, %v1348_v18 }
 0x6c7   :  { %4655 = vmatpush3.xpose.msk.msra.mxu0 %vm356_vm2, %v1587_v15  ;;  %4656 = vmatprep.mubr.msk.f32.mxu0 %vm5456_vm1, %v5455_v0 }
 0x6c8   :  { %4664 = vmatprep.subr.mxu0 %v5455_v0 }
 0x6ca   :  { %4657 = vmatmul.mubr.msk.f32.vlgmr.msra.gmra.mrb[18].mxu0 %vm356_vm2, %v1585_v19  ;;  %v6009_v19 = vld [vmem:[%s6481_s8] sm:$0xff] }
 0x6cb   :  { %4666 = vmatprep.mubr.msk.f32.mxu0 %vm5456_vm1, %v5455_v0  ;;  %v4992_v21 = vpack.i.bf16 %v2053_v20, %v6009_v19 }
 0x763   :  { %v928_v23 = vpop.f32.mrb[6].mxu1 }
 0x764   :  { %v4607_v24 = vpop.f32.mrb[7].mxu1  ;;  %4617 = vmatprep.mubr.msk.f32.mxu1 %vm356_vm2, %v928_v23  ;;  %v2057_v23 = vld [vmem:[%s6481_s8 + $0x28] sm:$0xff] }
 0x765   :  { %4618 = vmatmul.mubr.msk.f32.vlgmr.msra.gmra.mrb[8].mxu1 %vm356_vm2, %v5910_v44 }
 0x766   :  { %4624 = vmatprep.mubr.msk.f32.mxu1 %vm356_vm2, %v5904_v32  ;;  %4850 = vmatpush3.bf16.msra.mxu1 %v4847_v22  ;;  %v6026_v22 = vld [vmem:[%s6481_s8 + $0x20] sm:$0xff] }
 0x767   :  { %4637 = vmatprep.subr.mxu1 %v5455_v0  ;;  %v5002_v27 = vpack.i.bf16 %v2057_v23, %v6026_v22  ;;  %v224_v23 = vld [vmem:[#allocation5] sm:$0xff] }
 0x76d   :  { %4625 = vmatmul.mubr.msk.f32.vlgmr.msra.gmra.mrb[8].mxu1 %vm356_vm2, %v5906_v34  ;;  %v253_v34 = vld [vmem:[%s6510_s17 + $0x20] sm:$0xff] }
 0x76e   :  { %4638 = vmatpush3.msra.mxu1 %v1350_v28  ;;  %4639 = vmatprep.mubr.msk.f32.mxu1 %vm5456_vm1, %v5455_v0  ;;  %v4851_v44 = vpack.c.bf16 %v254_v43, %v253_v34  ;;  %v6037_v28 = vld [vmem:[%s6481_s8 + $0x30] sm:$0xff] }
 0x770   :  { %4852 = vmatprep.subr.bf16.mxu1 %v4851_v44 }
 0x771   :  { %4640 = vmatmul.mubr.msk.f32.vlgmr.msra.gmra.mrb[10].mxu1 %vm508_vm4, %v1347_v30  ;;  %v2059_v30 = vld [vmem:[%s6481_s8 + $0x38] sm:$0xff] }
 0x772   :  { %4854 = vmatpush3.bf16.msra.mxu1 %v4851_v44 }
 0x773   :  { %4659 = vmatprep.subr.mxu1 %v5455_v0 }
 0x799   :  { %v1497_v33 = vpop.f32.mrb[16].mxu0 }
 0x79a   :  { %v4646_v36 = vpop.f32.mrb[17].mxu0 }
 0x79b   :  { %v2061_v36 = vld [vmem:[%s6481_s8 + $0x48] sm:$0xff] }
 0x79d   :  { %v1658_v38 = vpop.f32.mrb[18].mxu0 }
 0x79e   :  { %v1659_v32 = vadd.f32 %v1658_v38, %v5852_v47  ;;  %v4658_v40 = vpop.f32.mrb[19].mxu0  ;;  %v5007_v38 = vpack.i.bf16 %v2059_v30, %v6037_v28 }
 0x79f   :  { %v6057_v40 = vld [vmem:[%s6481_s8 + $0x50] sm:$0xff] }
 0x7a0   :  { %v1740_v42 = vsel %vm508_vm4, %v1659_v32, -inf }
 0x7a1   :  { %1741 = vmax.xlane.f32.xlu0 %v1740_v42  ;;  %v2063_v42 = vld [vmem:[%s6481_s8 + $0x58] sm:$0xff] }
 0x7a2   :  { %v5017_v34 = vpack.i.bf16 %v2063_v42, %v6057_v40 }
 0x82e   :  { %v1742_v45 = vpop.xlane.xlu0 %1741 }
 0x82f   :  { %v1746_v46 = vsub.f32 %v1659_v32, %v1742_v45 }
 0x831   :  { %v1748_v48 = vmul.f32 1.442695, %v1746_v46 }
 0x833   :  { %5056 = vpow2.f32 %v1748_v48 }
 0x83d   :  { %v5057_v49 = vpop.eup %5056 }
 0x83e   :  { %v1752_v50 = vsel %vm508_vm4, %v5057_v49, 0.0 }
 0x83f   :  { %1753 = vadd.xlane.f32.xlu0 %v1752_v50 }
 0x844   :  { %v1421_v51 = vpop.f32.mrb[10].mxu1 }
 0x845   :  { %v4641_v52 = vpop.f32.mrb[11].mxu1  ;;  %4651 = vmatprep.mubr.msk.f32.mxu1 %vm356_vm2, %v1421_v51 }
 0x846   :  { %4652 = vmatmul.mubr.msk.f32.vlgmr.msra.gmra.mrb[8].mxu1 %vm356_vm2, %v1497_v33  ;;  %v6045_v33 = vld [vmem:[%s6481_s8 + $0x40] sm:$0xff] }
 0x847   :  { %4660 = vmatpush3.xpose.msk.msra.mxu1 %vm356_vm2, %v1665_v17  ;;  %4661 = vmatprep.mubr.msk.f32.mxu1 %vm5456_vm1, %v5455_v0  ;;  %v5012_v32 = vpack.i.bf16 %v2061_v36, %v6045_v33 }
 0x848   :  { %4669 = vmatprep.subr.mxu1 %v5455_v0 }
 0x84a   :  { %4662 = vmatmul.mubr.msk.f32.vlgmr.msra.gmra.mrb[12].mxu1 %vm356_vm2, %v1663_v53 }
 0x84b   :  { %4671 = vmatprep.mubr.msk.f32.mxu1 %vm5456_vm1, %v5455_v0 }
 0x8cc   :  { %v1754_v58 = vpop.xlane.xlu0 %1753 }
 0x8cd   :  { %5058 = vrcp.f32 %v1754_v58 }
 0x8d7   :  { %v5059_v60 = vpop.eup %5058 }
 0x8d8   :  { %v1760_v63 = vmul.f32 %v5059_v60, %v5057_v49 }
 0x91d   :  { %v1736_v54 = vpop.f32.mrb[12].mxu1 }
 0x91e   :  { %v1737_v55 = vadd.f32 %v1736_v54, %v5852_v47  ;;  %v4663_v56 = vpop.f32.mrb[13].mxu1 }
 0x920   :  { %v1743_v57 = vsel %vm508_vm4, %v1737_v55, -inf }
 0x921   :  { %1744 = vmax.xlane.f32.xlu1 %v1743_v57 }
 0x932   :  { %1762 = vrot.lane.b32.xlu1 %v5818_v37, %s5463_s18  ;;  %v255_v37 = vld [vmem:[%s6510_s17 + $0x30] sm:$0xff] }
 0x933   :  { %v4855_v5 = vpack.c.bf16 %v256_v3, %v255_v37 }
 0x9ae   :  { %v1745_v59 = vpop.xlane.xlu1 %1744 }
 0x9af   :  { %v1747_v61 = vsub.f32 %v1737_v55, %v1745_v59 }
 0x9b1   :  { %v1750_v62 = vmul.f32 1.442695, %v1747_v61 }
 0x9b2   :  { %v1763_v1 = vpop.permute.xlu1 %1762 }
 0x9b3   :  { %5060 = vpow2.f32 %v1750_v62  ;;  %4665 = vmatpush3.msra.mxu0 %v1763_v1 }
 0x9b4   :  { %4667 = vmatmul.mubr.msk.f32.vlgmr.msra.gmra.mrb[20].mxu0 %vm508_vm4, %v1760_v63 }
 0x9bd   :  { %v5061_v47 = vpop.eup %5060 }
 0x9be   :  { %v1755_v2 = vsel %vm508_vm4, %v5061_v47, 0.0 }
 0x9bf   :  { %1756 = vadd.xlane.f32.xlu0 %v1755_v2 }
 0x9d5   :  { %1838 = vrot.lane.b32.xlu0 %v5826_v41, %s5463_s18 }
 0xa4c   :  { %v1757_v4 = vpop.xlane.xlu0 %1756 }
 0xa4d   :  { %5062 = vrcp.f32 %v1757_v4 }
 0xa50   :  { %v1839_v6 = vpop.permute.xlu0 %1838 }
 0xa51   :  { %4670 = vmatpush3.msra.mxu1 %v1839_v6 }
 0xa52   :  { %4856 = vmatprep.subr.bf16.mxu1 %v4855_v5 }
 0xa57   :  { %v5063_v35 = vpop.eup %5062 }
 0xa58   :  { %v1761_v7 = vmul.f32 %v5063_v35, %v5061_v47 }
 0xa5a   :  { %4672 = vmatmul.mubr.msk.f32.vlgmr.msra.gmra.mrb[14].mxu1 %vm508_vm4, %v1761_v7 }
 0xa5b   :  { %4858 = vmatpush3.bf16.msra.mxu1 %v4855_v5 }
 0xa87   :  { %v1834_v41 = vpop.f32.mrb[20].mxu0 }
 0xa88   :  { %v4668_v8 = vpop.f32.mrb[21].mxu0  ;;  %4678 = vmatprep.mubr.msk.f32.mxu1 %vm356_vm2, %v1834_v41 }
 0xb2d   :  { %v1910_v9 = vpop.f32.mrb[14].mxu1 }
 0xb2e   :  { %v4673_v10 = vpop.f32.mrb[15].mxu1  ;;  %4679 = vmatmul.mubr.msk.f32.vlgmr.msra.gmra.mrb[8].mxu1 %vm356_vm2, %v1910_v9 }
 0xb2f   :  { %4716 = vmatprep.mubr.msk.f32.mxu1 %vm269_vm0, %v224_v23 }
 0xc01   :  { %v4680_v12 = vpop.f32.mrb[8].mxu1 }
 0xc02   :  { %v2004_v39 = vadd.f32 %v4680_v12, %v4368_v11  ;;  %v1986_v13 = vpop.f32.mrb[9].mxu1  ;;  %v2066_v12 = vld [vmem:[%s6481_s8 + $0x70] sm:$0xff] }
 0xc03   :  { %v2003_v14 = vadd.f32 %v4368_v11, %v1986_v13 }
 0xc04   :  { %v2006_v15 = vadd.f32 %v2004_v39, %v5799_v26  ;;  %v2055_v26 = vld [vmem:[%s6481_s8 + $0x18] sm:$0xff] }
 0xc05   :  { %v2005_v16 = vadd.f32 %v2003_v14, %v5793_v25  ;;  %v6018_v25 = vld [vmem:[%s6481_s8 + $0x10] sm:$0xff]  ;;  %v2067_v39 = vld [vmem:[%s6481_s8 + $0x78] sm:$0xff] }
 0xc06   :  { %v2012_v17 = vsel %vm269_vm0, %v2006_v15, 0.0  ;;  %v4997_v24 = vpack.i.bf16 %v2055_v26, %v6018_v25  ;;  %v4859_v20 = vpack.c.bf16 %v6018_v25, %v6009_v19  ;;  %v4867_v26 = vpack.c.bf16 %v6057_v40, %v6045_v33  ;;  %v2068_v19 = vld [vmem:[%s6482_s9] sm:$0x3] }
 0xc07   :  { %2013 = vadd.xlane.f32.xlu0 %v2012_v17  ;;  %v2009_v18 = vsel %vm269_vm0, %v2005_v16, 0.0  ;;  %v2065_v17 = vld [vmem:[%s6481_s8 + $0x68] sm:$0xff]  ;;  %v2082_v25 = vrot.slane %v2068_v19, %v5807_v29 }
 0xc08   :  { %2010 = vadd.xlane.f32.xlu1 %v2009_v18  ;;  %4860 = vmatprep.subr.bf16.mxu0 %v4859_v20 }
 0xc09   :  { %4862 = vmatpush3.bf16.msra.mxu0 %v4859_v20 }
 0xc19   :  { %4993 = vrot.lane.b32.xlu1 %v4992_v21, %s5457_s22  ;;  %v4863_v21 = vpack.c.bf16 %v6037_v28, %v6026_v22  ;;  %v2168_v22 = vrot.slane %v2068_v19, %v5812_v31 }
 0xc1b   :  { %4864 = vmatprep.subr.bf16.mxu0 %v4863_v21 }
 0xc1c   :  { %4866 = vmatpush3.bf16.msra.mxu0 %v4863_v21 }
 0xc1d   :  { %4998 = vrot.lane.b32.xlu0 %v4997_v24, %s5457_s22  ;;  %5003 = vrot.lane.b32.xlu1 %v5002_v27, %s5457_s22 }
 0xc1e   :  { %4868 = vmatprep.subr.bf16.mxu0 %v4867_v26 }
 0xc20   :  { %4870 = vmatpush3.bf16.msra.mxu0 %v4867_v26 }
 0xc21   :  { %5008 = vrot.lane.b32.xlu1 %v5007_v38, %s5457_s22  ;;  %5013 = vrot.lane.b32.xlu0 %v5012_v32, %s5457_s22 }
 0xc25   :  { %5018 = vrot.lane.b32.xlu1 %v5017_v34, %s5457_s22 }
 0xc94   :  { %v2014_v43 = vpop.xlane.xlu0 %2013 }
 0xc95   :  { %v2017_v44 = vmul.f32 0.015625, %v2014_v43  ;;  %v2011_v45 = vpop.xlane.xlu1 %2010 }
 0xc96   :  { %v2016_v46 = vmul.f32 0.015625, %v2011_v45 }
 0xc97   :  { %v6066_v48 = vsub.f32 %v2006_v15, %v2017_v44  ;;  %v5027_v15 = vpack.i.bf16 %v2067_v39, %v2066_v12 }
 0xc98   :  { %v6068_v49 = vsub.f32 %v2005_v16, %v2016_v46  ;;  %v4999_v50 = vpop.permute.xlu0 %4998  ;;  %v2064_v16 = vld [vmem:[%s6481_s8 + $0x60] sm:$0xff] }
 0xc99   :  { %v2021_v51 = vmul.f32 %v6066_v48, %v6066_v48  ;;  %v4994_v52 = vpop.permute.xlu1 %4993  ;;  %v5001_v53 = vunpack.i.h.bf16 %v4999_v50  ;;  %v5000_v54 = vunpack.i.l.bf16 %v4999_v50  ;;  %v5022_v18 = vpack.i.bf16 %v2065_v17, %v2064_v16 }
 0xc9a   :  { %v2020_v55 = vmul.f32 %v6068_v49, %v6068_v49  ;;  %v4996_v56 = vunpack.i.h.bf16 %v4994_v52  ;;  %v4995_v57 = vunpack.i.l.bf16 %v4994_v52  ;;  %v4871_v24 = vpack.c.bf16 %v2066_v12, %v2064_v16 }
 0xc9b   :  { %v2025_v58 = vsel %vm269_vm0, %v2021_v51, 0.0  ;;  %v2218_v59 = vsel %vm269_vm0, %v5000_v54, %v5001_v53  ;;  %v225_v51 = vld [vmem:[#allocation5 + $0x8] sm:$0xff]  ;;  %v4369_v53 = vld [vmem:[#allocation8] ss:$0 sm:$0xff] }
 0xc9c   :  { %2026 = vadd.xlane.f32.xlu0 %v2025_v58  ;;  %v2022_v60 = vsel %vm269_vm0, %v2020_v55, 0.0  ;;  %v2217_v61 = vsel %vm269_vm0, %v4995_v57, %v4996_v56  ;;  %v5014_v2 = vpop.permute.xlu0 %5013  ;;  %4872 = vmatprep.subr.bf16.mxu0 %v4871_v24  ;;  %v4370_v57 = vld [vmem:[#allocation10] ss:$0 sm:$0xff] }
 0xc9d   :  { %2023 = vadd.xlane.f32.xlu1 %v2022_v60  ;;  %v5004_v62 = vpop.permute.xlu1 %5003  ;;  %v4875_v63 = vpack.c.bf16 %v2218_v59, %v2217_v61  ;;  %v5016_v3 = vunpack.i.h.bf16 %v5014_v2  ;;  %v5015_v35 = vunpack.i.l.bf16 %v5014_v2  ;;  %4874 = vmatpush3.bf16.msra.mxu0 %v4871_v24 }
 0xc9e   :  { %v5006_v1 = vunpack.i.h.bf16 %v5004_v62  ;;  %v5005_v47 = vunpack.i.l.bf16 %v5004_v62  ;;  %4719 = vmatprep.subr.mxu0 %v5455_v0 }
 0xc9f   :  { %4876 = vmatprep.subr.bf16.mxu1 %v4875_v63  ;;  %v2221_v11 = vsel %vm269_vm0, %v5015_v35, %v5016_v3 }
 0xca0   :  { %4878 = vmatpush3.bf16.msra.mxu1 %v4875_v63  ;;  %v2219_v6 = vsel %vm269_vm0, %v5005_v47, %v5006_v1 }
 0xca1   :  { %v5009_v37 = vpop.permute.xlu1 %5008 }
 0xca2   :  { %v5011_v4 = vunpack.i.h.bf16 %v5009_v37  ;;  %v5010_v5 = vunpack.i.l.bf16 %v5009_v37 }
 0xca4   :  { %v2220_v7 = vsel %vm269_vm0, %v5010_v5, %v5011_v4 }
 0xca5   :  { %v4879_v41 = vpack.c.bf16 %v2220_v7, %v2219_v6  ;;  %v5019_v8 = vpop.permute.xlu1 %5018 }
 0xca6   :  { %v5021_v9 = vunpack.i.h.bf16 %v5019_v8  ;;  %v5020_v10 = vunpack.i.l.bf16 %v5019_v8 }
 0xca7   :  { %4880 = vmatprep.subr.bf16.mxu1 %v4879_v41 }
 0xca8   :  { %4882 = vmatpush3.bf16.msra.mxu1 %v4879_v41  ;;  %v2222_v13 = vsel %vm269_vm0, %v5020_v10, %v5021_v9 }
 0xca9   :  { %v4883_v14 = vpack.c.bf16 %v2222_v13, %v2221_v11 }
 0xcab   :  { %4884 = vmatprep.subr.bf16.mxu1 %v4883_v14 }
 0xcac   :  { %4886 = vmatpush3.bf16.msra.mxu1 %v4883_v14 }
 0xcae   :  { %5028 = vrot.lane.b32.xlu1 %v5027_v15, %s5457_s22 }
 0xcb2   :  { %5023 = vrot.lane.b32.xlu0 %v5022_v18, %s5457_s22  ;;  %2235 = vrot.lane.b32.xlu1 %v2168_v22, %s5457_s22 }
 0xcb6   :  { %2233 = vrot.lane.b32.xlu0 %v2082_v25, %s5457_s22 }
 0xd29   :  { %v2027_v27 = vpop.xlane.xlu0 %2026 }
 0xd2a   :  { %v2029_v28 = vmul.f32 0.015625, %v2027_v27  ;;  %v2024_v30 = vpop.xlane.xlu1 %2023 }
 0xd2b   :  { %v2028_v33 = vmul.f32 0.015625, %v2024_v30 }
 0xd2c   :  { %v2031_v36 = vadd.f32 1e-05, %v2029_v28 }
 0xd2d   :  { %v2030_v38 = vadd.f32 1e-05, %v2028_v33  ;;  %v5024_v32 = vpop.permute.xlu0 %5023 }
 0xd2e   :  { %5064 = vrsqrt.f32 %v2031_v36  ;;  %v5026_v40 = vunpack.i.h.bf16 %v5024_v32  ;;  %v5025_v42 = vunpack.i.l.bf16 %v5024_v32  ;;  %v5029_v34 = vpop.permute.xlu1 %5028 }
 0xd2f   :  { %5066 = vrsqrt.f32 %v2030_v38  ;;  %v5031_v43 = vunpack.i.h.bf16 %v5029_v34  ;;  %v5030_v44 = vunpack.i.l.bf16 %v5029_v34 }
 0xd30   :  { %v2223_v45 = vsel %vm269_vm0, %v5025_v42, %v5026_v40 }
 0xd31   :  { %v2224_v46 = vsel %vm269_vm0, %v5030_v44, %v5031_v43 }
 0xd32   :  { %v4887_v50 = vpack.c.bf16 %v2224_v46, %v2223_v45  ;;  %v2236_v62 = vpop.permute.xlu1 %2235 }
 0xd34   :  { %4888 = vmatprep.subr.bf16.mxu1 %v4887_v50 }
 0xd35   :  { %4890 = vmatpush3.bf16.msra.mxu1 %v4887_v50 }
 0xd36   :  { %4729 = vmatprep.subr.mxu1 %v5455_v0 }
 0xd38   :  { %v5065_v52 = vpop.eup %5064  ;;  %4717 = vmatmul.mubr.msk.f32.vlgmr.msra.gmra.mrb[16].mxu1 %vm269_vm0, %v225_v51 }
 0xd39   :  { %v5067_v54 = vpop.eup %5066  ;;  %v2035_v55 = vmul.f32 %v5065_v52, %v6066_v48  ;;  %4731 = vmatprep.mubr.msk.f32.mxu1 %vm5456_vm1, %v5455_v0  ;;  %v2234_v48 = vpop.permute.xlu0 %2233 }
 0xd3a   :  { %v2034_v56 = vmul.f32 %v5067_v54, %v6068_v49  ;;  %v2237_v49 = vsel %vm269_vm0, %v2234_v48, %v2236_v62 }
 0xd3b   :  { %v2043_v58 = vmul.f32 %v4369_v53, %v2035_v55 }
 0xd3c   :  { %v2042_v59 = vmul.f32 %v4369_v53, %v2034_v56 }
 0xd3d   :  { %v6121_v61 = vadd.f32 %v4370_v57, %v2043_v58 }
 0xd3e   :  { %v6119_v60 = vadd.f32 %v4370_v57, %v2042_v59 }
 0xd40   :  { %4697 = vmatprep.mubr.msk.f32.mxu0 %vm269_vm0, %v6119_v60 }
 0xd41   :  { %4698 = vmatmul.mubr.msk.f32.vlgmr.msra.gmra.mrb[22].mxu0 %vm269_vm0, %v6121_v61 }
 0xd42   :  { %4721 = vmatprep.mubr.msk.f32.mxu0 %vm5456_vm1, %v5455_v0 }
 0xe0b   :  { %v4718_v63 = vpop.f32.mrb[16].mxu1 }
 0xe0c   :  { %v2311_v1 = vpop.f32.mrb[17].mxu1  ;;  %v6137_v4 = vadd.f32 %v4718_v63, %v2237_v49 }
 0xe0d   :  { %v6130_v47 = vadd.f32 %v2311_v1, %v2237_v49 }
 0xe0f   :  { %4720 = vmatpush3.xpose.msk.msra.mxu0 %vm356_vm2, %v6130_v47 }
 0xe10   :  { %4724 = vmatprep.subr.mxu0 %v5455_v0 }
 0xe14   :  { %v4699_v2 = vpop.f32.mrb[22].mxu0 }
 0xe15   :  { %v2156_v37 = vpop.f32.mrb[23].mxu0  ;;  %v6145_v5 = vadd.f32 %v4699_v2, %v2082_v25 }
 0xe16   :  { %v6135_v3 = vadd.f32 %v2156_v37, %v2082_v25 }
 0xe18   :  { %4722 = vmatmul.mubr.msk.f32.vlgmr.msra.gmra.mrb[24].mxu0 %vm356_vm2, %v6135_v3 }
 0xe19   :  { %4725 = vmatpush3.xpose.msk.msra.mxu0 %vm356_vm2, %v6137_v4  ;;  %4726 = vmatprep.mubr.msk.f32.mxu0 %vm5456_vm1, %v5455_v0 }
 0xe1a   :  { %4734 = vmatprep.subr.mxu0 %v5455_v0 }
 0xe1c   :  { %4727 = vmatmul.mubr.msk.f32.vlgmr.msra.gmra.mrb[26].mxu0 %vm356_vm2, %v6145_v5 }
 0xe1d   :  { %4736 = vmatprep.mubr.msk.f32.mxu0 %vm5456_vm1, %v5455_v0 }
 0xeeb   :  { %v2392_v6 = vpop.f32.mrb[24].mxu0 }
 0xeec   :  { %v4723_v35 = vpop.f32.mrb[25].mxu0  ;;  %v2472_v14 = vsel %vm508_vm4, %v2392_v6, -inf }
 0xeef   :  { %v2468_v7 = vpop.f32.mrb[26].mxu0 }
 0xef0   :  { %v4728_v41 = vpop.f32.mrb[27].mxu0  ;;  %v2475_v8 = vsel %vm508_vm4, %v2468_v7, -inf }
 0xef1   :  { %2476 = vmax.xlane.f32.xlu0 %v2475_v8 }
 0xf07   :  { %2570 = vrot.lane.b32.xlu0 %v6137_v4, %s5457_s22 }
 0xf0b   :  { %2724 = vrot.lane.b32.xlu0 %v6145_v5, %s5459_s6 }
 0xf7e   :  { %v2477_v9 = vpop.xlane.xlu0 %2476 }
 0xf7f   :  { %v2479_v10 = vsub.f32 %v2468_v7, %v2477_v9 }
 0xf81   :  { %v2482_v11 = vmul.f32 1.442695, %v2479_v10 }
 0xf82   :  { %v2571_v12 = vpop.permute.xlu0 %2570 }
 0xf83   :  { %5068 = vpow2.f32 %v2482_v11  ;;  %4735 = vmatpush3.msra.mxu0 %v2571_v12 }
 0xf84   :  { %4744 = vmatprep.subr.mxu0 %v5455_v0 }
 0xf86   :  { %v2725_v20 = vpop.permute.xlu0 %2724 }
 0xf8d   :  { %v5069_v39 = vpop.eup %5068 }
 0xf8e   :  { %v2487_v13 = vsel %vm508_vm4, %v5069_v39, 0.0 }
 0xf8f   :  { %2488 = vadd.xlane.f32.xlu1 %v2487_v13 }
 0xfa0   :  { %2726 = vrot.lane.b32.xlu1 %v6137_v4, %s5459_s6 }
 0xfc4   :  { %2473 = vmax.xlane.f32.xlu1 %v2472_v14 }
 0xfd5   :  { %2648 = vrot.lane.b32.xlu1 %v6130_v47, %s5459_s6 }
 0xfd9   :  { %2646 = vrot.lane.b32.xlu1 %v6135_v3, %s5459_s6 }
 0xfdd   :  { %3140 = vrot.lane.b32.xlu1 %v6130_v47, %s5460_s1 }
0x101c   :  { %v2489_v15 = vpop.xlane.xlu1 %2488 }
0x101d   :  { %5070 = vrcp.f32 %v2489_v15 }
0x1020   :  { %v2727_v18 = vpop.permute.xlu1 %2726 }
0x1027   :  { %v5071_v16 = vpop.eup %5070 }
0x1028   :  { %v2493_v17 = vmul.f32 %v5071_v16, %v5069_v39  ;;  %v2071_v16 = vld [vmem:[#allocation11 + $0x10] sm:$0xff] }
0x102a   :  { %4737 = vmatmul.mubr.msk.f32.vlgmr.msra.gmra.mrb[28].mxu0 %vm508_vm4, %v2493_v17  ;;  %v2072_v17 = vld [vmem:[#allocation11 + $0x18] sm:$0xff] }
0x102b   :  { %4745 = vmatpush3.xpose.msk.msra.mxu0 %vm356_vm2, %v2727_v18  ;;  %4746 = vmatprep.mubr.msk.f32.mxu0 %vm5456_vm1, %v5455_v0  ;;  %v4891_v18 = vpack.c.bf16 %v2072_v17, %v2071_v16 }
0x102c   :  { %4754 = vmatprep.subr.mxu0 %v5455_v0 }
0x102e   :  { %4747 = vmatmul.mubr.msk.f32.vlgmr.msra.gmra.mrb[30].mxu0 %vm356_vm2, %v2725_v20  ;;  %v2069_v20 = vld [vmem:[#allocation11] sm:$0xff] }
0x102f   :  { %4756 = vmatprep.mubr.msk.f32.mxu0 %vm5456_vm1, %v5455_v0 }
0x1051   :  { %v2474_v21 = vpop.xlane.xlu1 %2473 }
0x1052   :  { %v2478_v26 = vsub.f32 %v2392_v6, %v2474_v21  ;;  %v2070_v21 = vld [vmem:[#allocation11 + $0x8] sm:$0xff] }
0x1054   :  { %v2480_v23 = vmul.f32 1.442695, %v2478_v26  ;;  %v4895_v26 = vpack.c.bf16 %v2070_v21, %v2069_v20 }
0x1055   :  { %v2649_v28 = vpop.permute.xlu1 %2648 }
0x1056   :  { %5072 = vpow2.f32 %v2480_v23 }
0x1059   :  { %v2647_v38 = vpop.permute.xlu1 %2646 }
0x105d   :  { %v3141_v56 = vpop.permute.xlu1 %3140 }
0x1060   :  { %v5073_v24 = vpop.eup %5072 }
0x1061   :  { %v2484_v19 = vsel %vm508_vm4, %v5073_v24, 0.0 }
0x1062   :  { %2485 = vadd.xlane.f32.xlu0 %v2484_v19 }
0x1078   :  { %2494 = vrot.lane.b32.xlu0 %v6130_v47, %s5457_s22 }
0x10ef   :  { %v2486_v25 = vpop.xlane.xlu0 %2485 }
0x10f0   :  { %5074 = vrcp.f32 %v2486_v25 }
0x10f3   :  { %v2495_v22 = vpop.permute.xlu0 %2494 }
0x10f4   :  { %4730 = vmatpush3.msra.mxu1 %v2495_v22 }
0x10f5   :  { %4739 = vmatprep.subr.mxu1 %v5455_v0 }
0x10fa   :  { %v5075_v27 = vpop.eup %5074 }
0x10fb   :  { %v2492_v30 = vmul.f32 %v5075_v27, %v5073_v24 }
0x10fd   :  { %4732 = vmatmul.mubr.msk.f32.vlgmr.msra.gmra.mrb[18].mxu1 %vm508_vm4, %v2492_v30  ;;  %v6181_v33 = vpop.f32.mrb[28].mxu0 }
0x10fe   :  { %4740 = vmatpush3.xpose.msk.msra.mxu1 %vm356_vm2, %v2649_v28  ;;  %v4738_v36 = vpop.f32.mrb[29].mxu0  ;;  %4741 = vmatprep.mubr.msk.f32.mxu1 %vm5456_vm1, %v5455_v0 }
0x10ff   :  { %4749 = vmatprep.subr.mxu1 %v5455_v0 }
0x1101   :  { %4742 = vmatmul.mubr.msk.f32.vlgmr.msra.gmra.mrb[20].mxu1 %vm356_vm2, %v2647_v38  ;;  %v2798_v32 = vpop.f32.mrb[30].mxu0 }
0x1102   :  { %v4748_v40 = vpop.f32.mrb[31].mxu0  ;;  %v2805_v42 = vsel %vm508_vm4, %v2798_v32, -inf  ;;  %4751 = vmatprep.mubr.msk.f32.mxu1 %vm5456_vm1, %v5455_v0 }
0x1103   :  { %2806 = vmax.xlane.f32.xlu0 %v2805_v42 }
0x1119   :  { %2900 = vrot.lane.b32.xlu0 %v6137_v4, %s5458_s10 }
0x111d   :  { %3138 = vrot.lane.b32.xlu0 %v6135_v3, %s5460_s1 }
0x1121   :  { %3216 = vrot.lane.b32.xlu0 %v6145_v5, %s5460_s1 }
0x1190   :  { %v2807_v34 = vpop.xlane.xlu0 %2806 }
0x1191   :  { %v2809_v43 = vsub.f32 %v2798_v32, %v2807_v34  ;;  %v2074_v34 = vld [vmem:[#allocation11 + $0x28] sm:$0xff] }
0x1193   :  { %v2812_v44 = vmul.f32 1.442695, %v2809_v43 }
0x1194   :  { %v2901_v45 = vpop.permute.xlu0 %2900 }
0x1195   :  { %5076 = vpow2.f32 %v2812_v44  ;;  %4755 = vmatpush3.msra.mxu0 %v2901_v45 }
0x1196   :  { %4773 = vmatprep.subr.mxu0 %v5455_v0 }
0x1198   :  { %v3139_v48 = vpop.permute.xlu0 %3138 }
0x119c   :  { %v3217_v49 = vpop.permute.xlu0 %3216 }
0x119f   :  { %v5077_v46 = vpop.eup %5076 }
0x11a0   :  { %v2817_v50 = vsel %vm508_vm4, %v5077_v46, 0.0 }
0x11a1   :  { %2818 = vadd.xlane.f32.xlu1 %v2817_v50 }
0x11b2   :  { %3218 = vrot.lane.b32.xlu1 %v6137_v4, %s5460_s1 }
0x11d0   :  { %v6201_v51 = vpop.f32.mrb[18].mxu1 }
0x11d1   :  { %v4733_v52 = vpop.f32.mrb[19].mxu1 }
0x11d4   :  { %v2720_v53 = vpop.f32.mrb[20].mxu1 }
0x11d5   :  { %v4743_v54 = vpop.f32.mrb[21].mxu1  ;;  %v2802_v55 = vsel %vm508_vm4, %v2720_v53, -inf }
0x11d6   :  { %2803 = vmax.xlane.f32.xlu1 %v2802_v55 }
0x122e   :  { %v2819_v57 = vpop.xlane.xlu1 %2818 }
0x122f   :  { %5078 = vrcp.f32 %v2819_v57 }
0x1232   :  { %v3219_v62 = vpop.permute.xlu1 %3218 }
0x1239   :  { %v5079_v58 = vpop.eup %5078 }
0x123a   :  { %v2823_v59 = vmul.f32 %v5079_v58, %v5077_v46 }
0x123c   :  { %4757 = vmatmul.mubr.msk.f32.vlgmr.msra.gmra.mrb[32].mxu0 %vm508_vm4, %v2823_v59 }
0x123d   :  { %4774 = vmatpush3.xpose.msk.msra.mxu0 %vm356_vm2, %v3141_v56  ;;  %4775 = vmatprep.mubr.msk.f32.mxu0 %vm5456_vm1, %v5455_v0 }
0x123e   :  { %4778 = vmatprep.subr.mxu0 %v5455_v0 }
0x1240   :  { %4776 = vmatmul.mubr.msk.f32.vlgmr.msra.gmra.mrb[34].mxu0 %vm356_vm2, %v3139_v48 }
0x1241   :  { %4779 = vmatpush3.xpose.msk.msra.mxu0 %vm356_vm2, %v3219_v62  ;;  %4780 = vmatprep.mubr.msk.f32.mxu0 %vm5456_vm1, %v5455_v0 }
0x1242   :  { %4788 = vmatprep.subr.mxu0 %v5455_v0 }
0x1244   :  { %4781 = vmatmul.mubr.msk.f32.vlgmr.msra.gmra.mrb[36].mxu0 %vm356_vm2, %v3217_v49 }
0x1245   :  { %4790 = vmatprep.mubr.msk.f32.mxu0 %vm5456_vm1, %v5455_v0 }
0x1263   :  { %v2804_v63 = vpop.xlane.xlu1 %2803 }
0x1264   :  { %v2808_v1 = vsub.f32 %v2720_v53, %v2804_v63 }
0x1266   :  { %v2810_v2 = vmul.f32 1.442695, %v2808_v1 }
0x1268   :  { %5080 = vpow2.f32 %v2810_v2 }
0x1272   :  { %v5081_v37 = vpop.eup %5080 }
0x1273   :  { %v2814_v6 = vsel %vm508_vm4, %v5081_v37, 0.0 }
0x1274   :  { %2815 = vadd.xlane.f32.xlu0 %v2814_v6 }
0x128a   :  { %2824 = vrot.lane.b32.xlu0 %v6130_v47, %s5458_s10 }
0x128e   :  { %3392 = vrot.lane.b32.xlu0 %v6137_v4, %s5461_s30 }
0x1292   :  { %3553 = vrot.lane.b32.xlu0 %v6130_v47, %s5463_s18 }
0x1296   :  { %3631 = vrot.lane.b32.xlu0 %v6137_v4, %s5463_s18 }
0x129a   :  { %3551 = vrot.lane.b32.xlu0 %v6135_v3, %s5463_s18 }
0x1301   :  { %v2816_v35 = vpop.xlane.xlu0 %2815 }
0x1302   :  { %5082 = vrcp.f32 %v2816_v35 }
0x1305   :  { %v2825_v7 = vpop.permute.xlu0 %2824 }
0x1306   :  { %4750 = vmatpush3.msra.mxu1 %v2825_v7 }
0x1307   :  { %4892 = vmatprep.subr.bf16.mxu1 %v4891_v18 }
0x1309   :  { %v3393_v41 = vpop.permute.xlu0 %3392 }
0x130a   :  { %4789 = vmatpush3.msra.mxu0 %v3393_v41 }
0x130b   :  { %4800 = vmatprep.subr.mxu0 %v5455_v0 }
0x130c   :  { %v5083_v8 = vpop.eup %5082 }
0x130d   :  { %v2822_v9 = vmul.f32 %v5083_v8, %v5081_v37  ;;  %v3554_v46 = vpop.permute.xlu0 %3553 }
0x130f   :  { %4752 = vmatmul.mubr.msk.f32.vlgmr.msra.gmra.mrb[22].mxu1 %vm508_vm4, %v2822_v9  ;;  %v2972_v10 = vpop.f32.mrb[32].mxu0 }
0x1310   :  { %v4758_v11 = vpop.f32.mrb[33].mxu0  ;;  %4894 = vmatpush3.bf16.msra.mxu1 %v4891_v18 }
0x1311   :  { %4896 = vmatprep.subr.bf16.mxu1 %v4895_v26 }
0x1313   :  { %v3212_v12 = vpop.f32.mrb[34].mxu0 }
0x1314   :  { %v4777_v39 = vpop.f32.mrb[35].mxu0  ;;  %v3294_v13 = vsel %vm508_vm4, %v3212_v12, -inf }
0x1315   :  { %3295 = vmax.xlane.f32.xlu1 %v3294_v13 }
0x1317   :  { %v3290_v3 = vpop.f32.mrb[36].mxu0 }
0x1318   :  { %v4782_v14 = vpop.f32.mrb[37].mxu0  ;;  %v3297_v15 = vsel %vm508_vm4, %v3290_v3, -inf }
0x1319   :  { %3298 = vmax.xlane.f32.xlu1 %v3297_v15  ;;  %v2076_v15 = vld [vmem:[#allocation11 + $0x38] sm:$0xff] }
0x13a2   :  { %v3296_v23 = vpop.xlane.xlu1 %3295 }
0x13a3   :  { %v3300_v24 = vsub.f32 %v3212_v12, %v3296_v23 }
0x13a5   :  { %v3302_v19 = vmul.f32 1.442695, %v3300_v24 }
0x13a6   :  { %v3299_v25 = vpop.xlane.xlu1 %3298 }
0x13a7   :  { %5084 = vpow2.f32 %v3302_v19  ;;  %v3301_v22 = vsub.f32 %v3290_v3, %v3299_v25 }
0x13a9   :  { %v3304_v27 = vmul.f32 1.442695, %v3301_v22 }
0x13ab   :  { %5086 = vpow2.f32 %v3304_v27 }
0x13b1   :  { %v5085_v28 = vpop.eup %5084 }
0x13b2   :  { %v3306_v30 = vsel %vm508_vm4, %v5085_v28, 0.0 }
0x13b3   :  { %3307 = vadd.xlane.f32.xlu1 %v3306_v30 }
0x13b5   :  { %v5087_v36 = vpop.eup %5086 }
0x13b6   :  { %v3309_v38 = vsel %vm508_vm4, %v5087_v36, 0.0 }
0x13b7   :  { %3310 = vadd.xlane.f32.xlu1 %v3309_v38 }
0x13c8   :  { %3316 = vrot.lane.b32.xlu1 %v6130_v47, %s5461_s30 }
0x13cc   :  { %3629 = vrot.lane.b32.xlu1 %v6145_v5, %s5463_s18  ;;  %v2073_v5 = vld [vmem:[#allocation11 + $0x20] sm:$0xff] }
0x13cd   :  { %v4899_v44 = vpack.c.bf16 %v2074_v34, %v2073_v5 }
0x13e2   :  { %v2896_v32 = vpop.f32.mrb[22].mxu1 }
0x13e3   :  { %v4753_v40 = vpop.f32.mrb[23].mxu1  ;;  %4763 = vmatprep.mubr.msk.f32.mxu1 %vm356_vm2, %v2896_v32 }
0x13e4   :  { %4764 = vmatmul.mubr.msk.f32.vlgmr.msra.gmra.mrb[24].mxu1 %vm356_vm2, %v2972_v10 }
0x13e5   :  { %4770 = vmatprep.mubr.msk.f32.mxu1 %vm356_vm2, %v6201_v51  ;;  %4898 = vmatpush3.bf16.msra.mxu1 %v4895_v26 }
0x13e6   :  { %4783 = vmatprep.subr.mxu1 %v5455_v0 }
0x13ec   :  { %4771 = vmatmul.mubr.msk.f32.vlgmr.msra.gmra.mrb[24].mxu1 %vm356_vm2, %v6181_v33  ;;  %v3632_v33 = vpop.permute.xlu0 %3631 }
0x13ed   :  { %4785 = vmatprep.mubr.msk.f32.mxu1 %vm5456_vm1, %v5455_v0 }
0x13f0   :  { %v3552_v54 = vpop.permute.xlu0 %3551 }
0x1440   :  { %v3308_v42 = vpop.xlane.xlu1 %3307 }
0x1441   :  { %5088 = vrcp.f32 %v3308_v42 }
0x1444   :  { %v3311_v43 = vpop.xlane.xlu1 %3310 }
0x1445   :  { %5090 = vrcp.f32 %v3311_v43 }
0x1448   :  { %v3317_v45 = vpop.permute.xlu1 %3316 }
0x1449   :  { %4784 = vmatpush3.msra.mxu1 %v3317_v45 }
0x144a   :  { %4900 = vmatprep.subr.bf16.mxu1 %v4899_v44 }
0x144b   :  { %v5089_v50 = vpop.eup %5088 }
0x144c   :  { %v3314_v51 = vmul.f32 %v5089_v50, %v5085_v28  ;;  %v3630_v59 = vpop.permute.xlu1 %3629  ;;  %v4019_v50 = vld [vmem:[%s6487_s14 + $0x8] sm:$0xff] }
0x144e   :  { %4786 = vmatmul.mubr.msk.f32.vlgmr.msra.gmra.mrb[26].mxu1 %vm508_vm4, %v3314_v51  ;;  %v4021_v51 = vld [vmem:[%s6487_s14 + $0x18] sm:$0xff] }
0x144f   :  { %v5091_v52 = vpop.eup %5090  ;;  %4902 = vmatpush3.bf16.msra.mxu1 %v4899_v44 }
0x1450   :  { %v3315_v53 = vmul.f32 %v5091_v52, %v5087_v36  ;;  %4805 = vmatprep.subr.mxu1 %v5455_v0  ;;  %v4907_v52 = vpack.c.bf16 %v4021_v51, %v4019_v50  ;;  %v4155_v50 = vld [vmem:[%s6489_s16 + $0x30] sm:$0xff] }
0x1452   :  { %4791 = vmatmul.mubr.msk.f32.vlgmr.msra.gmra.mrb[38].mxu0 %vm508_vm4, %v3315_v53  ;;  %v4020_v53 = vld [vmem:[%s6487_s14 + $0x10] sm:$0xff] }
0x1453   :  { %4801 = vmatpush3.xpose.msk.msra.mxu0 %vm356_vm2, %v3554_v46  ;;  %4802 = vmatprep.mubr.msk.f32.mxu0 %vm5456_vm1, %v5455_v0 }
0x1454   :  { %4810 = vmatprep.subr.mxu0 %v5455_v0 }
0x1456   :  { %4803 = vmatmul.mubr.msk.f32.vlgmr.msra.gmra.mrb[40].mxu0 %vm356_vm2, %v3552_v54 }
0x1457   :  { %4812 = vmatprep.mubr.msk.f32.mxu0 %vm5456_vm1, %v5455_v0 }
0x1521   :  { %v3388_v55 = vpop.f32.mrb[26].mxu1 }
0x1522   :  { %v4787_v56 = vpop.f32.mrb[27].mxu1  ;;  %4797 = vmatprep.mubr.msk.f32.mxu1 %vm356_vm2, %v3388_v55  ;;  %v4023_v55 = vld [vmem:[%s6487_s14 + $0x28] sm:$0xff] }
0x1523   :  { %v4025_v56 = vld [vmem:[%s6487_s14 + $0x38] sm:$0xff] }
0x1525   :  { %v3464_v57 = vpop.f32.mrb[38].mxu0 }
0x1526   :  { %v4792_v58 = vpop.f32.mrb[39].mxu0  ;;  %4798 = vmatmul.mubr.msk.f32.vlgmr.msra.gmra.mrb[24].mxu1 %vm356_vm2, %v3464_v57  ;;  %v4911_v57 = vpack.c.bf16 %v4025_v56, %v4023_v55  ;;  %v4158_v55 = vld [vmem:[%s6489_s16 + $0x48] sm:$0xff] }
0x1527   :  { %4806 = vmatpush3.xpose.msk.msra.mxu1 %vm356_vm2, %v3632_v33  ;;  %4807 = vmatprep.mubr.msk.f32.mxu1 %vm5456_vm1, %v5455_v0  ;;  %v4018_v33 = vld [vmem:[%s6487_s14] sm:$0xff] }
0x1528   :  { %4815 = vmatprep.subr.mxu1 %v5455_v0  ;;  %v4909_v54 = vpack.c.bf16 %v4020_v53, %v4018_v33  ;;  %v4022_v58 = vld [vmem:[%s6487_s14 + $0x20] sm:$0xff]  ;;  %v4174_v33 = vld [vmem:[%s6489_s16 + $0xc8] sm:$0xff] }
0x1529   :  { %v3625_v48 = vpop.f32.mrb[40].mxu0 }
0x152a   :  { %v4804_v62 = vpop.f32.mrb[41].mxu0  ;;  %4808 = vmatmul.mubr.msk.f32.vlgmr.msra.gmra.mrb[28].mxu1 %vm356_vm2, %v3630_v59  ;;  %v3707_v49 = vsel %vm508_vm4, %v3625_v48, -inf  ;;  %v4024_v59 = vld [vmem:[%s6487_s14 + $0x30] sm:$0xff] }
0x152b   :  { %3708 = vmax.xlane.f32.xlu0 %v3707_v49  ;;  %4817 = vmatprep.mubr.msk.f32.mxu1 %vm5456_vm1, %v5455_v0  ;;  %v4027_v62 = vld [vmem:[%s6487_s14 + $0x48] sm:$0xff]  ;;  %v4029_v49 = vld [vmem:[%s6487_s14 + $0x58] sm:$0xff] }
0x15b8   :  { %v3709_v63 = vpop.xlane.xlu0 %3708 }
0x15b9   :  { %v3713_v1 = vsub.f32 %v3625_v48, %v3709_v63  ;;  %v4913_v48 = vpack.c.bf16 %v4024_v59, %v4022_v58  ;;  %v4915_v63 = vpack.c.bf16 %v4029_v49, %v4027_v62  ;;  %v4176_v58 = vld [vmem:[%s6489_s16 + $0xd8] sm:$0xff] }
0x15ba   :  { %v4160_v62 = vld [vmem:[%s6489_s16 + $0x58] sm:$0xff] }
0x15bb   :  { %v3715_v2 = vmul.f32 1.442695, %v3713_v1  ;;  %v4026_v1 = vld [vmem:[%s6487_s14 + $0x40] sm:$0xff] }
0x15bd   :  { %5092 = vpow2.f32 %v3715_v2  ;;  %v4028_v2 = vld [vmem:[%s6487_s14 + $0x50] sm:$0xff] }
0x15c7   :  { %v5093_v37 = vpop.eup %5092 }
0x15c8   :  { %v3719_v6 = vsel %vm508_vm4, %v5093_v37, 0.0 }
0x15c9   :  { %3720 = vadd.xlane.f32.xlu0 %v3719_v6  ;;  %v4031_v6 = vld [vmem:[%s6487_s14 + $0x68] sm:$0xff] }
0x15fd   :  { %v3703_v35 = vpop.f32.mrb[28].mxu1 }
0x15fe   :  { %v4809_v7 = vpop.f32.mrb[29].mxu1  ;;  %v3710_v41 = vsel %vm508_vm4, %v3703_v35, -inf }
0x15ff   :  { %3711 = vmax.xlane.f32.xlu1 %v3710_v41  ;;  %v4030_v7 = vld [vmem:[%s6487_s14 + $0x60] sm:$0xff] }
0x1610   :  { %3729 = vrot.lane.b32.xlu1 %v6130_v47, %s5462_s11  ;;  %v2075_v47 = vld [vmem:[#allocation11 + $0x30] sm:$0xff] }
0x1611   :  { %v4903_v17 = vpack.c.bf16 %v2076_v15, %v2075_v47 }
0x1656   :  { %v3721_v8 = vpop.xlane.xlu0 %3720 }
0x1657   :  { %5094 = vrcp.f32 %v3721_v8  ;;  %v4032_v8 = vld [vmem:[%s6487_s14 + $0x70] sm:$0xff] }
0x1661   :  { %v5095_v10 = vpop.eup %5094 }
0x1662   :  { %v3727_v39 = vmul.f32 %v5095_v10, %v5093_v37  ;;  %v4917_v37 = vpack.c.bf16 %v4028_v2, %v4026_v1  ;;  %v4165_v10 = vld [vmem:[%s6489_s16 + $0x80] sm:$0xff]  ;;  %v4178_v1 = vld [vmem:[%s6489_s16 + $0xe8] sm:$0xff] }
0x1663   :  { %v4161_v2 = vld [vmem:[%s6489_s16 + $0x60] sm:$0xff] }
0x168c   :  { %v3712_v9 = vpop.xlane.xlu1 %3711 }
0x168d   :  { %v3714_v11 = vsub.f32 %v3703_v35, %v3712_v9  ;;  %v4033_v35 = vld [vmem:[%s6487_s14 + $0x78] sm:$0xff]  ;;  %v4921_v9 = vpack.c.bf16 %v4032_v8, %v4030_v7 }
0x168e   :  { %v4919_v41 = vpack.c.bf16 %v4033_v35, %v4031_v6  ;;  %v4162_v6 = vld [vmem:[%s6489_s16 + $0x68] sm:$0xff]  ;;  %v4179_v35 = vld [vmem:[%s6489_s16 + $0xf0] sm:$0xff]  ;;  %v4180_v7 = vld [vmem:[%s6489_s16 + $0xf8] sm:$0xff] }
0x168f   :  { %v3717_v12 = vmul.f32 1.442695, %v3714_v11  ;;  %v4166_v11 = vld [vmem:[%s6489_s16 + $0x88] sm:$0xff]  ;;  %v4951_v8 = vpack.c.bf16 %v4180_v7, %v4179_v35  ;;  %v4417_v35 = vld [vmem:[#allocation20] ss:$0 sm:$0xff] }
0x1690   :  { %v3730_v13 = vpop.permute.xlu1 %3729 }
0x1691   :  { %5096 = vpow2.f32 %v3717_v12  ;;  %4811 = vmatpush3.msra.mxu0 %v3730_v13  ;;  %v4149_v12 = vld [vmem:[%s6489_s16] sm:$0xff]  ;;  %v4150_v13 = vld [vmem:[%s6489_s16 + $0x8] sm:$0xff] }
0x1692   :  { %4813 = vmatmul.mubr.msk.f32.vlgmr.msra.gmra.mrb[42].mxu0 %vm508_vm4, %v3727_v39  ;;  %4908 = vmatprep.subr.bf16.mxu0 %v4907_v52  ;;  %v4923_v39 = vpack.c.bf16 %v4166_v11, %v4165_v10  ;;  %v4925_v47 = vpack.c.bf16 %v4150_v13, %v4149_v12  ;;  %v4173_v52 = vld [vmem:[%s6489_s16 + $0xc0] sm:$0xff]  ;;  %v4164_v10 = vld [vmem:[%s6489_s16 + $0x78] sm:$0xff]  ;;  %v4034_v12 = vld [vmem:[#allocation17] sm:$0x3] }
0x1693   :  { %4116 = vmatprep.mubr.f32.mxu0 %v5455_v0  ;;  %4910 = vmatpush1.bf16.msra.mxu0 %v4909_v54  ;;  %v4939_v53 = vpack.c.bf16 %v4174_v33, %v4173_v52  ;;  %v4157_v54 = vld [vmem:[%s6489_s16 + $0x40] sm:$0xff]  ;;  %v4043_v13 = vrot.slane %v4034_v12, %v5812_v31 }
0x1694   :  { %4912 = vmatprep.subr.bf16.mxu0 %v4911_v57  ;;  %v4941_v56 = vpack.c.bf16 %v4158_v55, %v4157_v54  ;;  %v4175_v57 = vld [vmem:[%s6489_s16 + $0xd0] sm:$0xff] }
0x1695   :  { %v4943_v59 = vpack.c.bf16 %v4176_v58, %v4175_v57 }
0x1697   :  { %4914 = vmatpush1.bf16.msra.mxu0 %v4913_v48  ;;  %v4159_v48 = vld [vmem:[%s6489_s16 + $0x50] sm:$0xff] }
0x1698   :  { %4916 = vmatprep.subr.bf16.mxu0 %v4915_v63  ;;  %v4945_v49 = vpack.c.bf16 %v4160_v62, %v4159_v48  ;;  %v4177_v63 = vld [vmem:[%s6489_s16 + $0xe0] sm:$0xff] }
0x169b   :  { %v5097_v3 = vpop.eup %5096  ;;  %4918 = vmatpush1.bf16.msra.mxu0 %v4917_v37  ;;  %v4947_v37 = vpack.c.bf16 %v4178_v1, %v4177_v63 }
0x169c   :  { %v3722_v14 = vsel %vm508_vm4, %v5097_v3, 0.0  ;;  %4920 = vmatprep.subr.bf16.mxu0 %v4919_v41  ;;  %v4949_v41 = vpack.c.bf16 %v4162_v6, %v4161_v2 }
0x169d   :  { %3723 = vadd.xlane.f32.xlu0 %v3722_v14  ;;  %v4168_v14 = vld [vmem:[%s6489_s16 + $0x98] sm:$0xff] }
0x169f   :  { %4922 = vmatpush1.bf16.msra.mxu0 %v4921_v9  ;;  %v4163_v9 = vld [vmem:[%s6489_s16 + $0x70] sm:$0xff] }
0x16a0   :  { %v4953_v11 = vpack.c.bf16 %v4164_v10, %v4163_v9 }
0x16b3   :  { %3805 = vrot.lane.b32.xlu0 %v6137_v4, %s5462_s11  ;;  %v4407_v4 = vld [vmem:[#allocation13] ss:$0 sm:$0xff] }
0x172a   :  { %v3724_v16 = vpop.xlane.xlu0 %3723 }
0x172b   :  { %5098 = vrcp.f32 %v3724_v16  ;;  %v4151_v16 = vld [vmem:[%s6489_s16 + $0x10] sm:$0xff] }
0x172e   :  { %v3806_v18 = vpop.permute.xlu0 %3805 }
0x172f   :  { %4816 = vmatpush3.msra.mxu1 %v3806_v18  ;;  %v4169_v18 = vld [vmem:[%s6489_s16 + $0xa0] sm:$0xff] }
0x1730   :  { %4904 = vmatprep.subr.bf16.mxu1 %v4903_v17 }
0x1735   :  { %v5099_v20 = vpop.eup %5098 }
0x1736   :  { %v3728_v21 = vmul.f32 %v5099_v20, %v5097_v3  ;;  %v4167_v3 = vld [vmem:[%s6489_s16 + $0x90] sm:$0xff]  ;;  %v4170_v20 = vld [vmem:[%s6489_s16 + $0xa8] sm:$0xff] }
0x1737   :  { %v4927_v15 = vpack.c.bf16 %v4168_v14, %v4167_v3 }
0x1738   :  { %4818 = vmatmul.mubr.msk.f32.vlgmr.msra.gmra.mrb[30].mxu1 %vm508_vm4, %v3728_v21 }
0x1739   :  { %4906 = vmatpush3.bf16.msra.mxu1 %v4903_v17  ;;  %v4152_v17 = vld [vmem:[%s6489_s16 + $0x18] sm:$0xff] }
0x173a   :  { %4924 = vmatprep.subr.bf16.mxu1 %v4923_v39  ;;  %v4929_v21 = vpack.c.bf16 %v4152_v17, %v4151_v16  ;;  %v4039_v39 = vrot.slane %v4034_v12, %v5807_v29 }
0x1765   :  { %v3801_v26 = vpop.f32.mrb[42].mxu0 }
0x1766   :  { %v4814_v23 = vpop.f32.mrb[43].mxu0  ;;  %4824 = vmatprep.mubr.msk.f32.mxu1 %vm356_vm2, %v3801_v26  ;;  %v4931_v26 = vpack.c.bf16 %v4170_v20, %v4169_v18 }
0x1767   :  { %v4153_v23 = vld [vmem:[%s6489_s16 + $0x20] sm:$0xff] }
0x180b   :  { %v3877_v24 = vpop.f32.mrb[30].mxu1 }
0x180c   :  { %v4819_v19 = vpop.f32.mrb[31].mxu1  ;;  %4825 = vmatmul.mubr.msk.f32.vlgmr.msra.gmra.mrb[24].mxu1 %vm356_vm2, %v3877_v24  ;;  %v4154_v24 = vld [vmem:[%s6489_s16 + $0x28] sm:$0xff] }
0x180d   :  { %4926 = vmatpush3.bf16.msra.mxu1 %v4925_v47  ;;  %v4933_v19 = vpack.c.bf16 %v4154_v24, %v4153_v23 }
0x180e   :  { %4928 = vmatprep.subr.bf16.mxu1 %v4927_v15 }
0x1811   :  { %4930 = vmatpush3.bf16.msra.mxu1 %v4929_v21 }
0x1812   :  { %4932 = vmatprep.subr.bf16.mxu1 %v4931_v26 }
0x1815   :  { %4934 = vmatpush3.bf16.msra.mxu1 %v4933_v19 }
0x18df   :  { %v4826_v25 = vpop.f32.mrb[24].mxu1 }
0x18e0   :  { %v3971_v22 = vadd.f32 %v4826_v25, %v4407_v4  ;;  %v3953_v27 = vpop.f32.mrb[25].mxu1 }
0x18e1   :  { %v3970_v28 = vadd.f32 %v4407_v4, %v3953_v27 }
0x18e2   :  { %v3973_v30 = vadd.f32 %v3971_v22, %v6121_v61 }
0x18e3   :  { %v3972_v36 = vadd.f32 %v3970_v28, %v6119_v60 }
0x18e4   :  { %v3979_v38 = vsel %vm269_vm0, %v3973_v30, 0.0 }
0x18e5   :  { %3980 = vadd.xlane.f32.xlu0 %v3979_v38  ;;  %v3976_v32 = vsel %vm269_vm0, %v3972_v36, 0.0 }
0x18e6   :  { %3977 = vadd.xlane.f32.xlu1 %v3976_v32  ;;  %v4408_v32 = vld [vmem:[#allocation14] ss:$0 sm:$0xff] }
0x1972   :  { %v3981_v40 = vpop.xlane.xlu0 %3980 }
0x1973   :  { %v3983_v42 = vmul.f32 0.015625, %v3981_v40  ;;  %v3978_v5 = vpop.xlane.xlu1 %3977 }
0x1974   :  { %v3982_v34 = vmul.f32 0.015625, %v3978_v5  ;;  %v4409_v5 = vld [vmem:[#allocation16] ss:$0 sm:$0xff] }
0x1975   :  { %v6283_v43 = vsub.f32 %v3973_v30, %v3983_v42 }
0x1976   :  { %v6285_v44 = vsub.f32 %v3972_v36, %v3982_v34 }
0x1977   :  { %v3987_v45 = vmul.f32 %v6283_v43, %v6283_v43 }
0x1978   :  { %v3986_v60 = vmul.f32 %v6285_v44, %v6285_v44 }
0x1979   :  { %v3991_v61 = vsel %vm269_vm0, %v3987_v45, 0.0 }
0x197a   :  { %3992 = vadd.xlane.f32.xlu0 %v3991_v61  ;;  %v3988_v46 = vsel %vm269_vm0, %v3986_v60, 0.0 }
0x197b   :  { %3989 = vadd.xlane.f32.xlu1 %v3988_v46 }
0x1a07   :  { %v3993_v4 = vpop.xlane.xlu0 %3992 }
0x1a08   :  { %v3995_v25 = vmul.f32 0.015625, %v3993_v4  ;;  %v3990_v22 = vpop.xlane.xlu1 %3989 }
0x1a09   :  { %v3994_v27 = vmul.f32 0.015625, %v3990_v22 }
0x1a0a   :  { %v3997_v28 = vadd.f32 1e-05, %v3995_v25 }
0x1a0b   :  { %v3996_v30 = vadd.f32 1e-05, %v3994_v27 }
0x1a0c   :  { %5100 = vrsqrt.f32 %v3997_v28 }
0x1a0d   :  { %5102 = vrsqrt.f32 %v3996_v30 }
0x1a16   :  { %v5101_v36 = vpop.eup %5100 }
0x1a17   :  { %v5103_v38 = vpop.eup %5102  ;;  %v4001_v42 = vmul.f32 %v5101_v36, %v6283_v43  ;;  %v4172_v43 = vld [vmem:[%s6489_s16 + $0xb8] sm:$0xff] }
0x1a18   :  { %v4000_v40 = vmul.f32 %v5103_v38, %v6285_v44  ;;  %v4171_v44 = vld [vmem:[%s6489_s16 + $0xb0] sm:$0xff] }
0x1a19   :  { %v4009_v60 = vmul.f32 %v4408_v32, %v4001_v42  ;;  %v4935_v46 = vpack.c.bf16 %v4172_v43, %v4171_v44  ;;  %v4416_v42 = vld [vmem:[#allocation19] ss:$0 sm:$0xff] }
0x1a1a   :  { %v4008_v34 = vmul.f32 %v4408_v32, %v4000_v40 }
0x1a1b   :  { %v6384_v61 = vadd.f32 %v4409_v5, %v4009_v60  ;;  %4936 = vmatprep.subr.bf16.mxu1 %v4935_v46 }
0x1a1c   :  { %v6379_v45 = vadd.f32 %v4409_v5, %v4008_v34 }
0x1a1e   :  { %4410 = vmatmul.mubr.msk.f32.vlgmr.msra.gmra.mrb[44].mxu0 %vm269_vm0, %v6379_v45 }
0x1a1f   :  { %4122 = vmatprep.mubr.f32.mxu0 %v5455_v0  ;;  %v4156_v0 = vld [vmem:[%s6489_s16 + $0x38] sm:$0xff]  ;;  %s5464_s16 = smov [#allocation23]  }
0x1a20   :  { %v4937_v51 = vpack.c.bf16 %v4156_v0, %v4155_v50  ;;  %s4316_s23 = sshll.u32 %s5464_s16, 4  ;;  %s4317_s23 = int_to_ptr.vmem [resolvable:$true] %s4316_s23 }
0x1a21   :  { %s5402_s4 = scalar_lea.vmem %s4317_s23, 256  ;;  %p5407_p7 = scmp.lt.s32.totalorder %s4317_s23, %s4317_s23 }
0x1a22   :  { %4411 = vmatmul.mubr.msk.f32.gmra.mrb[46].mxu0 %vm269_vm0, %v6384_v61  ;;  %4938 = vmatpush3.bf16.msra.mxu1 %v4937_v51  ;;  %p5403_p6 = scmp.ne.s32.totalorder %s4317_s23, %s5402_s4  ;;  %p5408_p8 = scmp.lt.s32.totalorder %s5402_s4, %s5402_s4 }
0x1a23   :  { %4940 = vmatprep.subr.bf16.mxu1 %v4939_v53 }
0x1a24   :  { %p5409_p9 = por %p5408_p8, %p5407_p7 }
0x1a26   :  { %4942 = vmatpush3.bf16.msra.mxu1 %v4941_v56  ;;  %p5410_p10 = pnand %p5409_p9, %p5403_p6 }
0x1a27   :  { %4944 = vmatprep.subr.bf16.mxu1 %v4943_v59 }
0x1a2a   :  { %4946 = vmatpush3.bf16.msra.mxu1 %v4945_v49 }
0x1a2b   :  { %4948 = vmatprep.subr.bf16.mxu1 %v4947_v37 }
0x1a2e   :  { %4950 = vmatpush3.bf16.msra.mxu1 %v4949_v41  ;;  %v4418_v41 = vld [vmem:[#allocation22] ss:$0 sm:$0xff] }
0x1a2f   :  { %4952 = vmatprep.subr.bf16.mxu1 %v4951_v8 }
0x1a32   :  { %4954 = vmatpush3.bf16.msra.mxu1 %v4953_v11 }
0x1af1   :  { %v4118_v3 = vpop.f32.mrb[44].mxu0 }
0x1af2   :  { %v4119_v14 = vadd.f32 %v4118_v3, %v4039_v39  ;;  %v4120_v47 = vpop.f32.mrb[45].mxu0 }
0x1af3   :  { %v4121_v15 = vadd.f32 %v4120_v47, %v4043_v13 }
0x1af4   :  { %v4133_v16 = vmul.f32 1.442695, %v4119_v14  ;;  %vm4129_vm6 = vcmp.gt.f32.partialorder %v4119_v14, 0.0 }
0x1af5   :  { %v4135_v17 = vmul.f32 1.442695, %v4121_v15  ;;  %v4124_v18 = vpop.f32.mrb[46].mxu0  ;;  %vm4130_vm5 = vcmp.gt.f32.partialorder %v4121_v15, 0.0 }
0x1af6   :  { %5104 = vpow2.f32 %v4133_v16  ;;  %v4125_v20 = vadd.f32 %v4124_v18, %v4039_v39  ;;  %v4126_v21 = vpop.f32.mrb[47].mxu0 }
0x1af7   :  { %5106 = vpow2.f32 %v4135_v17  ;;  %v4127_v26 = vadd.f32 %v4126_v21, %v4043_v13 }
0x1af8   :  { %v4137_v23 = vmul.f32 1.442695, %v4125_v20  ;;  %vm4131_vm8 = vcmp.gt.f32.partialorder %v4125_v20, 0.0 }
0x1af9   :  { %v4139_v24 = vmul.f32 1.442695, %v4127_v26  ;;  %vm4132_vm7 = vcmp.gt.f32.partialorder %v4127_v26, 0.0 }
0x1afa   :  { %5108 = vpow2.f32 %v4137_v23 }
0x1afb   :  { %5110 = vpow2.f32 %v4139_v24 }
0x1b00   :  { %v5105_v19 = vpop.eup %5104 }
0x1b01   :  { %v5107_v29 = vpop.eup %5106  ;;  %v4412_v4 = vadd.f32 -1.0, %v5105_v19 }
0x1b02   :  { %v4413_v31 = vadd.f32 -1.0, %v5107_v29 }
0x1b03   :  { %v4145_v28 = vsel %vm4129_vm6, %v4119_v14, %v4412_v4 }
0x1b04   :  { %v5109_v25 = vpop.eup %5108  ;;  %v4146_v22 = vsel %vm4130_vm5, %v4121_v15, %v4413_v31 }
0x1b05   :  { %v5111_v27 = vpop.eup %5110  ;;  %4252 = vmatprep.mubr.f32.mxu1 %v4146_v22  ;;  %v4414_v30 = vadd.f32 -1.0, %v5109_v25 }
0x1b06   :  { %4253 = vmatmul.mubr.f32.vlgmr.msra.gmra.mrb[32].mxu1 %v4145_v28  ;;  %v4415_v36 = vadd.f32 -1.0, %v5111_v27 }
0x1b07   :  { %v4147_v32 = vsel %vm4131_vm8, %v4125_v20, %v4414_v30 }
0x1b08   :  { %v4148_v38 = vsel %vm4132_vm7, %v4127_v26, %v4415_v36 }
0x1b09   :  { %4257 = vmatprep.mubr.f32.mxu1 %v4148_v38 }
0x1b0a   :  { %4258 = vmatmul.mubr.f32.gmra.mrb[34].mxu1 %v4147_v32 }
0x1bd9   :  { %v4567_v40 = vpop.f32.mrb[32].mxu1 }
0x1bda   :  { %v4568_v5 = vpop.f32.mrb[33].mxu1 }
0x1bdb   :  { %v4569_v34 = vadd.f32 %v4568_v5, %v4567_v40 }
0x1bdd   :  { %v4255_v60 = vadd.f32 %v4569_v34, %v4416_v42  ;;  %v4570_v44 = vpop.f32.mrb[34].mxu1 }
0x1bde   :  { %v4571_v43 = vpop.f32.mrb[35].mxu1 }
0x1bdf   :  { %v4572_v46 = vadd.f32 %v4571_v43, %v4570_v44  ;;  %v4263_v50 = vadd.f32 %v4255_v60, %v6379_v45 }
0x1be1   :  { %v4260_v0 = vadd.f32 %v4572_v46, %v4416_v42  ;;  %v4267_v51 = vsel %vm269_vm0, %v4263_v50, 0.0 }
0x1be2   :  { %4268 = vadd.xlane.f32.xlu1 %v4267_v51 }
0x1be3   :  { %v4264_v52 = vadd.f32 %v4260_v0, %v6384_v61 }
0x1be5   :  { %v4270_v33 = vsel %vm269_vm0, %v4264_v52, 0.0 }
0x1be6   :  { %4271 = vadd.xlane.f32.xlu0 %v4270_v33 }
0x1c6f   :  { %v4269_v53 = vpop.xlane.xlu1 %4268 }
0x1c70   :  { %v4273_v54 = vmul.f32 0.015625, %v4269_v53 }
0x1c72   :  { %v4275_v55 = vsub.f32 %v4263_v50, %v4273_v54 }
0x1c73   :  { %v4272_v56 = vpop.xlane.xlu0 %4271 }
0x1c74   :  { %v4274_v57 = vmul.f32 0.015625, %v4272_v56  ;;  %v4277_v58 = vmul.f32 %v4275_v55, %v4275_v55 }
0x1c76   :  { %v4276_v59 = vsub.f32 %v4264_v52, %v4274_v57  ;;  %v4279_v48 = vsel %vm269_vm0, %v4277_v58, 0.0 }
0x1c77   :  { %4280 = vadd.xlane.f32.xlu1 %v4279_v48 }
0x1c78   :  { %v4278_v45 = vmul.f32 %v4276_v59, %v4276_v59 }
0x1c7a   :  { %v4282_v62 = vsel %vm269_vm0, %v4278_v45, 0.0 }
0x1c7b   :  { %4283 = vadd.xlane.f32.xlu0 %v4282_v62 }
0x1d04   :  { %v4281_v49 = vpop.xlane.xlu1 %4280 }
0x1d05   :  { %v4285_v63 = vmul.f32 0.015625, %v4281_v49 }
0x1d07   :  { %v4287_v61 = vadd.f32 1e-05, %v4285_v63 }
0x1d08   :  { %v4284_v1 = vpop.xlane.xlu0 %4283 }
0x1d09   :  { %5112 = vrsqrt.f32 %v4287_v61  ;;  %v4286_v2 = vmul.f32 0.015625, %v4284_v1 }
0x1d0b   :  { %v4288_v37 = vadd.f32 1e-05, %v4286_v2 }
0x1d0d   :  { %5114 = vrsqrt.f32 %v4288_v37 }
0x1d13   :  { %v5113_v6 = vpop.eup %5112 }
0x1d14   :  { %v4291_v7 = vmul.f32 %v5113_v6, %v4275_v55 }
0x1d16   :  { %v4299_v8 = vmul.f32 %v4417_v35, %v4291_v7 }
0x1d17   :  { %v5115_v9 = vpop.eup %5114 }
0x1d18   :  { %v4292_v10 = vmul.f32 %v5115_v9, %v4276_v59  ;;  %v4307_v11 = vadd.f32 %v4418_v41, %v4299_v8 }
0x1d1a   :  { %v4300_v12 = vmul.f32 %v4417_v35, %v4292_v10  ;;  %4309 = vst.msk [vmem:[#allocation23] sm:$0xff] %vm269_vm0, %v4307_v11 }
0x1d1c   :  { %v4308_v39 = vadd.f32 %v4418_v41, %v4300_v12 }
0x1d1e   :  { %4310 = vst.msk [vmem:[#allocation23 + $0x8] sm:$0xff] %vm269_vm0, %v4308_v39 }
0x1d1f   :  { %5413 = shalt.err (!%p5410_p10)
}
0x1d20   :  { %s5414_s15 = scalar_lea.hbm %s6493_s20, 256 }
0x1d21   :  { %p5415_p11 = scmp.ne.s32.totalorder %s6493_s20, %s5414_s15  ;;  %p5418_p12 = scmp.lt.u32.totalorder %s5414_s15, %s6493_s20 }
0x1d23   :  { %p5420_p13 = pnand %p5418_p12, %p5415_p11 }
0x1d25   :  { %5423 = shalt.err (!%p5420_p13)
}
0x1d26   :  { %4322 = dma.vmem_to_hbm [thread:$0]  %s4317_s23, 256, %s6493_s20, [#allocation4], %s6506_s24, %s6506_s24, %s5443_s21  }
0x1d27   :  { %5438 = dma.done.wait [#allocation4], 256  }
0x1d28   :  { %5439 = vsyncadd [#allocation4], 4294967040 }
0x1d29   :  { %4326 = vsyncpa [#allocation3], 1 }
0x1d2a   :  { %4327 = vsyncpa [#allocation6], 1 }
0x1d2b   :  { %4328 = vsyncpa [#allocation9], 1 }
0x1d2c   :  { %4329 = vsyncpa [#allocation12], 1 }
0x1d2d   :  { %4330 = vsyncpa [#allocation15], 1 }
0x1d2e   :  { %4331 = vsyncpa [#allocation18], 1 }
0x1d2f   :  { %4332 = vsyncpa [#allocation21], 1 }
0x1d30   :  { %4333 = vsyncpa [#allocation4], 1 }

</bundles_post_ra>
